<compile_context>
chip_gen: v5e
topology: v5e:2x2
jax: 0.10.0
libtpu: 0.0.40
codegen_flags: <defaults>
</compile_context>

<pallas_src>
import functools

import numpy as np
import jax
import jax.numpy as jnp
from jax.experimental import pallas as pl
from jax.experimental.pallas import tpu as pltpu

DRUG_FEATURES = 78        # logical input feature dim (PyTorch)
F_PAD = 128               # padded to a lane multiple
HIDDEN_GCN = 300          # logical GCN hidden dim (PyTorch)
H_PAD = 384               # padded to a lane multiple
HIDDEN_MLP = 1024
OUTPUT_DIM = 128
NEG_INF = -1e30


# ------------------------------ Pallas kernels ------------------------------

def _gcn_pool_kernel(a_ref, x_ref, mask_ref,
                     w1_ref, b1_ref, w2_ref, b2_ref,
                     pooled_ref, *, g_tile, n_per_graph):
    """One graph-batch per grid step: 2 GCN layers + stripe max-pool.

    a_ref     : [n_tile, n_tile] bf16  block-diagonal normalized adjacency
    x_ref     : [n_tile, F_PAD]  bf16  node features (zero padded)
    mask_ref  : [n_tile, 1]      f32   additive validity mask (0 valid, -1e30 pad)
    w*/b*     : bf16 weights / f32 bias rows (padded, VMEM-resident across grid)
    pooled_ref: [g_tile, H_PAD]  bf16  per-graph max-pooled embeddings
    """
    a = a_ref[...]

    # GCNConv 1: relu((A @ x) @ W1 + b1)  -- A-side matmul contracts over F_PAD=128.
    ax = jnp.dot(a, x_ref[...], preferred_element_type=jnp.float32)
    h = jnp.dot(ax.astype(jnp.bfloat16), w1_ref[...],
                preferred_element_type=jnp.float32)
    h = jnp.maximum(h + b1_ref[...], 0.0).astype(jnp.bfloat16)      # [n_tile, H_PAD]

    # GCNConv 2: relu(A @ (h @ W2) + b2)
    hw = jnp.dot(h, w2_ref[...], preferred_element_type=jnp.float32)
    h2 = jnp.dot(a, hw.astype(jnp.bfloat16), preferred_element_type=jnp.float32)
    h2 = jnp.maximum(h2 + b2_ref[...], 0.0)                          # [n_tile, H_PAD] f32

    # Global max pool per graph stripe (padded/empty rows pushed to -1e30).
    hm = h2 + mask_ref[...]                                          # [n_tile, H_PAD]
    pooled = jnp.max(hm.reshape(g_tile, n_per_graph, H_PAD), axis=1)
    # Post-ReLU h2 >= 0 on valid rows, so clamping at 0 is exact for real graphs
    # and neutralizes the -1e30 result of empty graph slots.
    pooled_ref[...] = jnp.maximum(pooled, 0.0).astype(pooled_ref.dtype)


def _mlp_kernel(p_ref, w3_ref, b3_ref, w4_ref, b4_ref, out_ref):
    """drug_embed MLP over a tall tile of graph rows:
    Linear -> ReLU -> Dropout(id) -> Linear -> ReLU -> Dropout(id)."""
    # TODO(synk): dropout is identity in eval mode; training-mode stochastic dropout not implemented.
    e = jnp.dot(p_ref[...], w3_ref[...], preferred_element_type=jnp.float32) + b3_ref[...]
    e = jnp.maximum(e, 0.0)
    o = jnp.dot(e.astype(jnp.bfloat16), w4_ref[...],
                preferred_element_type=jnp.float32) + b4_ref[...]
    out_ref[...] = jnp.maximum(o, 0.0)


# ------------------------------ host wrapper ------------------------------

def _pick_row_tile(m):
    for t in (512, 256, 128, 64, 32, 16, 8):
        if m % t == 0:
            return t
    return m


def drug_gcn_encoder(a_p, x_p, mask_p, params, n_tile, g_tile, n_per_graph):
    """a_p: [B*n_tile, n_tile] bf16, x_p: [B*n_tile, F_PAD] bf16,
    mask_p: [B*n_tile, 1] f32  ->  out: [B*g_tile, OUTPUT_DIM] f32."""
    num_batches = x_p.shape[0] // n_tile
    w1, b1, w2, b2, w3, b3, w4, b4 = params

    def const_spec(arr):
        # Same block every grid step -> Mosaic keeps the weight VMEM-resident
        # (no per-step re-DMA).
        return pl.BlockSpec(arr.shape, lambda i: (0, 0))

    # ---- pass 1: GCN layers + per-graph stripe max pool ----
    gcn_flops = 2 * num_batches * (
        n_tile * n_tile * F_PAD +          # A @ x
        n_tile * F_PAD * H_PAD +           # (.) @ W1
        n_tile * H_PAD * H_PAD +           # h  @ W2
        n_tile * n_tile * H_PAD)           # A @ (.)
    gcn_bytes = (num_batches * (n_tile * n_tile * 2 + n_tile * F_PAD * 2 +
                                n_tile * 4 + g_tile * H_PAD * 2)
                 + (F_PAD * H_PAD + H_PAD * H_PAD) * 2 + 2 * H_PAD * 4)

    pooled = pl.pallas_call(
        functools.partial(_gcn_pool_kernel, g_tile=g_tile, n_per_graph=n_per_graph),
        out_shape=jax.ShapeDtypeStruct((num_batches * g_tile, H_PAD), jnp.bfloat16),
        grid_spec=pltpu.PrefetchScalarGridSpec(
            num_scalar_prefetch=0,
            grid=(num_batches,),
            in_specs=[
                pl.BlockSpec((n_tile, n_tile), lambda b: (b, 0)),   # A_hat block
                pl.BlockSpec((n_tile, F_PAD), lambda b: (b, 0)),    # node features
                pl.BlockSpec((n_tile, 1), lambda b: (b, 0)),        # validity mask
                const_spec(w1), const_spec(b1),
                const_spec(w2), const_spec(b2),
            ],
            out_specs=pl.BlockSpec((g_tile, H_PAD), lambda b: (b, 0)),
        ),
        compiler_params=pltpu.CompilerParams(
            dimension_semantics=("parallel",),          # graph batches independent
            vmem_limit_bytes=64 * 1024 * 1024),
        cost_estimate=pl.CostEstimate(flops=int(gcn_flops), transcendentals=0,
                                      bytes_accessed=int(gcn_bytes)),
    )(a_p, x_p, mask_p, w1, b1, w2, b2)

    # ---- pass 2: MLP over all graph rows at once (tall M for the MXU) ----
    m_total = num_batches * g_tile
    tm = _pick_row_tile(m_total)
    mlp_flops = 2 * m_total * (H_PAD * HIDDEN_MLP + HIDDEN_MLP * OUTPUT_DIM)
    mlp_bytes = (m_total * H_PAD * 2 + H_PAD * HIDDEN_MLP * 2 +
                 HIDDEN_MLP * OUTPUT_DIM * 2 + m_total * OUTPUT_DIM * 4)

    out = pl.pallas_call(
        _mlp_kernel,
        out_shape=jax.ShapeDtypeStruct((m_total, OUTPUT_DIM), jnp.float32),
        grid_spec=pltpu.PrefetchScalarGridSpec(
            num_scalar_prefetch=0,
            grid=(m_total // tm,),
            in_specs=[
                pl.BlockSpec((tm, H_PAD), lambda i: (i, 0)),
                const_spec(w3), const_spec(b3),
                const_spec(w4), const_spec(b4),
            ],
            out_specs=pl.BlockSpec((tm, OUTPUT_DIM), lambda i: (i, 0)),
        ),
        compiler_params=pltpu.CompilerParams(
            dimension_semantics=("parallel",),
            vmem_limit_bytes=64 * 1024 * 1024),
        cost_estimate=pl.CostEstimate(flops=int(mlp_flops), transcendentals=0,
                                      bytes_accessed=int(mlp_bytes)),
    )(pooled, w3, b3, w4, b4)
    return out


# ----------------------- host-side packing & parameters -----------------------

def _round_up(v, m):
    return ((v + m - 1) // m) * m


def _normalized_adjacency_np(edges_local, n):
    """Dense D^-1/2 (A + I) D^-1/2, matching PyG GCNConv's gcn_norm (self loops)."""
    a = np.zeros((n, n), np.float32)
    for s, d in edges_local:
        a[d, s] += 1.0
    a += np.eye(n, dtype=np.float32)
    deg = a.sum(axis=1)
    dinv = np.where(deg > 0.0, 1.0 / np.sqrt(deg), 0.0).astype(np.float32)
    return dinv[:, None] * a * dinv[None, :]


def pack_batches(x, edge_index, batch, num_graphs, graphs_per_batch):
    """Pack PyG-style (x, edge_index, batch) into fixed per-graph stripes.

    Each graph occupies n_per_graph rows (multiple of 16); g_tile stripes per
    graph batch so n_tile = g_tile * n_per_graph is lane aligned.  The pool mask
    degenerates to an [n_tile, 1] additive validity vector."""
    x = np.asarray(x, np.float32)
    ei = np.asarray(edge_index, np.int64)
    bt = np.asarray(batch, np.int64)

    counts = np.array([(bt == g).sum() for g in range(num_graphs)], np.int64)
    n_per_graph = max(16, _round_up(int(counts.max()), 16))   # bf16 sublane packing
    g_tile = max(8, _round_up(graphs_per_batch, 8))
    n_tile = g_tile * n_per_graph

    num_batches = -(-num_graphs // graphs_per_batch)
    num_batches = max(2, num_batches)
    if num_batches % 2:                      # even grid -> both v7x TensorCores busy
        num_batches += 1

    xs = np.zeros((num_batches, n_tile, F_PAD), np.float32)
    adjs = np.zeros((num_batches, n_tile, n_tile), np.float32)
    masks = np.full((num_batches, n_tile, 1), NEG_INF, np.float32)

    for g in range(num_graphs):
        b = g // graphs_per_batch
        slot = g % graphs_per_batch
        node_ids = np.nonzero(bt == g)[0]
        ng = len(node_ids)
        r0 = slot * n_per_graph
        xs[b, r0:r0 + ng, :DRUG_FEATURES] = x[node_ids]
        local = {int(n): i for i, n in enumerate(node_ids)}
        edges_local = [(local[int(s)], local[int(d)])
                       for s, d in zip(ei[0], ei[1])
                       if int(s) in local and int(d) in local]
        adjs[b, r0:r0 + ng, r0:r0 + ng] = _normalized_adjacency_np(edges_local, ng)
        masks[b, r0:r0 + ng, 0] = 0.0

    out_rows = np.array(
        [(g // graphs_per_batch) * g_tile + g % graphs_per_batch
         for g in range(num_graphs)], np.int32)

    # TODO(synk): A_hat is cast to bf16 (~3 significant digits on the degree
    # normalization); keep it f32 if accuracy on large/dense graphs matters.
    x_p = jnp.asarray(xs.reshape(num_batches * n_tile, F_PAD)).astype(jnp.bfloat16)
    a_p = jnp.asarray(adjs.reshape(num_batches * n_tile, n_tile)).astype(jnp.bfloat16)
    m_p = jnp.asarray(masks.reshape(num_batches * n_tile, 1))
    return a_p, x_p, m_p, n_tile, g_tile, n_per_graph, jnp.asarray(out_rows)


def make_params(key):
    """Deterministic Glorot-style init at the logical PyTorch shapes."""
    def dense(k, fan_in, fan_out):
        scale = jnp.sqrt(2.0 / (fan_in + fan_out)).astype(jnp.float32)
        w = jax.random.normal(k, (fan_in, fan_out), jnp.float32) * scale
        b = jnp.zeros((fan_out,), jnp.float32)
        return w, b

    k1, k2, k3, k4 = jax.random.split(key, 4)
    return (dense(k1, DRUG_FEATURES, HIDDEN_GCN),   # GCNConv(78, 300)
            dense(k2, HIDDEN_GCN, HIDDEN_GCN),      # GCNConv(300, 300)
            dense(k3, HIDDEN_GCN, HIDDEN_MLP),      # Linear(300, 1024)
            dense(k4, HIDDEN_MLP, OUTPUT_DIM))      # Linear(1024, 128)


def pad_params(raw_params):
    """Zero-pad to lane multiples; weights -> bf16 (MXU operands), biases -> f32 rows.
    The zero padding is mathematically inert through matmul/bias/ReLU."""
    (w1, b1), (w2, b2), (w3, b3), (w4, b4) = raw_params

    def pad_w(w, rows, cols):
        w = jnp.pad(w, ((0, rows - w.shape[0]), (0, cols - w.shape[1])))
        return w.astype(jnp.bfloat16)

    def pad_b(b, cols):
        return jnp.pad(b, (0, cols - b.shape[0])).reshape(1, cols).astype(jnp.float32)

    return (pad_w(w1, F_PAD, H_PAD), pad_b(b1, H_PAD),
            pad_w(w2, H_PAD, H_PAD), pad_b(b2, H_PAD),
            pad_w(w3, H_PAD, HIDDEN_MLP), pad_b(b3, HIDDEN_MLP),
            pad_w(w4, HIDDEN_MLP, OUTPUT_DIM), pad_b(b4, OUTPUT_DIM))


# ------------------------------ plain-JAX reference ------------------------------

def reference_forward(x, edge_index, batch, num_graphs, raw_params):
    """f32 reference of the PyTorch forward (dropout in eval mode)."""
    (w1, b1), (w2, b2), (w3, b3), (w4, b4) = raw_params
    n = x.shape[0]
    src, dst = edge_index[0], edge_index[1]
    a = jnp.zeros((n, n), jnp.float32).at[dst, src].add(1.0) + jnp.eye(n, dtype=jnp.float32)
    deg = a.sum(axis=1)
    dinv = jnp.where(deg > 0, 1.0 / jnp.sqrt(deg), 0.0)
    a = dinv[:, None] * a * dinv[None, :]

    h = jax.nn.relu(a @ (x @ w1) + b1)
    h = jax.nn.relu(a @ (h @ w2) + b2)
    member = batch[None, :] == jnp.arange(num_graphs)[:, None]          # [G, N]
    pooled = jnp.max(jnp.where(member[:, :, None], h[None, :, :], -jnp.inf), axis=1)
    e = jax.nn.relu(pooled @ w3 + b3)
    return jax.nn.relu(e @ w4 + b4)


# ------------------------------------ test ------------------------------------

if __name__ == "__main__":
    key = jax.random.PRNGKey(0)
    k_x, k_p = jax.random.split(key)

    # 16 small molecular graphs (undirected chains of 3..6 nodes), packed
    # 8 graphs per batch -> g_tile=8, n_per_graph=16, n_tile=128, grid=(2,).
    num_graphs, graphs_per_batch = 16, 8
    nodes_per_graph = [3 + (g % 4) for g in range(num_graphs)]
    num_nodes = sum(nodes_per_graph)
    x = jax.random.normal(k_x, (num_nodes, DRUG_FEATURES), jnp.float32)

    edges, batch_list = [], []
    base = 0
    for g, ng in enumerate(nodes_per_graph):
        for i in range(ng - 1):
            edges.append((base + i, base + i + 1))
            edges.append((base + i + 1, base + i))
        batch_list += [g] * ng
        base += ng
    edge_index = jnp.asarray(np.array(edges, np.int32).T)              # [2, E]
    batch = jnp.asarray(np.array(batch_list, np.int32))                # [num_nodes]

    raw_params = make_params(k_p)
    params = pad_params(raw_params)

    a_p, x_p, m_p, n_tile, g_tile, n_per_graph, out_rows = pack_batches(
        x, edge_index, batch, num_graphs, graphs_per_batch)

    out_padded = drug_gcn_encoder(a_p, x_p, m_p, params, n_tile, g_tile, n_per_graph)
    out = jnp.take(out_padded, out_rows, axis=0)                        # [num_graphs, 128]
    jax.block_until_ready(out)

    assert out.shape == (num_graphs, OUTPUT_DIM) and out.dtype == jnp.float32
    assert bool(jnp.all(jnp.isfinite(out)))

    # Loose tolerance: bf16 MXU operands with f32 accumulation vs f32 reference.
    ref = reference_forward(x, edge_index, batch, num_graphs, raw_params)
    assert bool(jnp.allclose(out, ref, rtol=1e-1, atol=1e-1)), \
        float(jnp.max(jnp.abs(out - ref)))

    print("KERNEL_OK")
</pallas_src>

<mosaic_0001>
module attributes {stable_mosaic.version = 11 : i64} {
  func.func @_gcn_pool_kernel(%arg0: i32, %arg1: memref<128x128xbf16, #tpu.memory_space<vmem>>, %arg2: memref<128x128xbf16, #tpu.memory_space<vmem>>, %arg3: memref<128x1xf32, #tpu.memory_space<vmem>>, %arg4: memref<128x384xbf16, #tpu.memory_space<vmem>>, %arg5: memref<1x384xf32, #tpu.memory_space<vmem>>, %arg6: memref<384x384xbf16, #tpu.memory_space<vmem>>, %arg7: memref<1x384xf32, #tpu.memory_space<vmem>>, %arg8: memref<8x384xbf16, #tpu.memory_space<vmem>>) attributes {dimension_semantics = [#tpu.dimension_semantics<parallel>], iteration_bounds = array<i64: 2>, scalar_prefetch = 0 : i64, scratch_operands = 0 : i64, tpu.core_type = #tpu.core_type<tc>, window_params = [{transform_indices = @transform_0, window_bounds = array<i64: 128, 128>}, {transform_indices = @transform_1, window_bounds = array<i64: 128, 128>}, {transform_indices = @transform_2, window_bounds = array<i64: 128, 1>}, {pipeline_mode = #tpu.pipeline_mode<synchronous>, transform_indices = @transform_3, window_bounds = array<i64: 128, 384>}, {pipeline_mode = #tpu.pipeline_mode<synchronous>, transform_indices = @transform_4, window_bounds = array<i64: 1, 384>}, {pipeline_mode = #tpu.pipeline_mode<synchronous>, transform_indices = @transform_5, window_bounds = array<i64: 384, 384>}, {pipeline_mode = #tpu.pipeline_mode<synchronous>, transform_indices = @transform_6, window_bounds = array<i64: 1, 384>}, {transform_indices = @transform_7, window_bounds = array<i64: 8, 384>}]} {
    %c0 = arith.constant 0 : index
    %c0_0 = arith.constant 0 : index
    %0 = vector.load %arg1[%c0, %c0_0] : memref<128x128xbf16, #tpu.memory_space<vmem>>, vector<128x128xbf16>
    %c0_1 = arith.constant 0 : index
    %c0_2 = arith.constant 0 : index
    %1 = vector.load %arg2[%c0_1, %c0_2] : memref<128x128xbf16, #tpu.memory_space<vmem>>, vector<128x128xbf16>
    %cst = arith.constant dense<0.000000e+00> : vector<128x128xf32>
    %2 = tpu.matmul %0, %1, %cst {dimension_numbers = #tpu.dot_dimension_numbers<[1], [0], [0], [1], [0, 0, 1, 1], [], []>} : vector<128x128xbf16>, vector<128x128xbf16>, vector<128x128xf32> -> vector<128x128xf32>
    %3 = arith.truncf %2 : vector<128x128xf32> to vector<128x128xbf16>
    %c0_3 = arith.constant 0 : index
    %c0_4 = arith.constant 0 : index
    %4 = vector.load %arg4[%c0_3, %c0_4] : memref<128x384xbf16, #tpu.memory_space<vmem>>, vector<128x384xbf16>
    %cst_5 = arith.constant dense<0.000000e+00> : vector<128x384xf32>
    %5 = tpu.matmul %3, %4, %cst_5 {dimension_numbers = #tpu.dot_dimension_numbers<[1], [0], [0], [1], [0, 0, 1, 1], [], []>} : vector<128x128xbf16>, vector<128x384xbf16>, vector<128x384xf32> -> vector<128x384xf32>
    %c0_6 = arith.constant 0 : index
    %c0_7 = arith.constant 0 : index
    %6 = vector.load %arg5[%c0_6, %c0_7] : memref<1x384xf32, #tpu.memory_space<vmem>>, vector<1x384xf32>
    %7 = vector.broadcast %6 : vector<1x384xf32> to vector<128x384xf32>
    %8 = arith.addf %5, %7 : vector<128x384xf32>
    %cst_8 = arith.constant 0.000000e+00 : f32
    %9 = vector.broadcast %cst_8 : f32 to vector<128x384xf32>
    %10 = arith.maximumf %8, %9 : vector<128x384xf32>
    %11 = arith.truncf %10 : vector<128x384xf32> to vector<128x384xbf16>
    %c0_9 = arith.constant 0 : index
    %c0_10 = arith.constant 0 : index
    %12 = vector.load %arg6[%c0_9, %c0_10] : memref<384x384xbf16, #tpu.memory_space<vmem>>, vector<384x384xbf16>
    %cst_11 = arith.constant dense<0.000000e+00> : vector<128x384xf32>
    %13 = tpu.matmul %11, %12, %cst_11 {dimension_numbers = #tpu.dot_dimension_numbers<[1], [0], [0], [1], [0, 0, 1, 1], [], []>} : vector<128x384xbf16>, vector<384x384xbf16>, vector<128x384xf32> -> vector<128x384xf32>
    %14 = arith.truncf %13 : vector<128x384xf32> to vector<128x384xbf16>
    %cst_12 = arith.constant dense<0.000000e+00> : vector<128x384xf32>
    %15 = tpu.matmul %0, %14, %cst_12 {dimension_numbers = #tpu.dot_dimension_numbers<[1], [0], [0], [1], [0, 0, 1, 1], [], []>} : vector<128x128xbf16>, vector<128x384xbf16>, vector<128x384xf32> -> vector<128x384xf32>
    %c0_13 = arith.constant 0 : index
    %c0_14 = arith.constant 0 : index
    %16 = vector.load %arg7[%c0_13, %c0_14] : memref<1x384xf32, #tpu.memory_space<vmem>>, vector<1x384xf32>
    %17 = vector.broadcast %16 : vector<1x384xf32> to vector<128x384xf32>
    %18 = arith.addf %15, %17 : vector<128x384xf32>
    %cst_15 = arith.constant 0.000000e+00 : f32
    %19 = vector.broadcast %cst_15 : f32 to vector<128x384xf32>
    %20 = arith.maximumf %18, %19 : vector<128x384xf32>
    %c0_16 = arith.constant 0 : index
    %c0_17 = arith.constant 0 : index
    %21 = vector.load %arg3[%c0_16, %c0_17] : memref<128x1xf32, #tpu.memory_space<vmem>>, vector<128x1xf32>
    %22 = vector.broadcast %21 : vector<128x1xf32> to vector<128x384xf32>
    %23 = arith.addf %20, %22 : vector<128x384xf32>
    %24 = vector.shape_cast %23 : vector<128x384xf32> to vector<8x16x384xf32>
    %cst_18 = arith.constant dense<0xFF800000> : vector<8x384xf32>
    %25 = vector.multi_reduction <maximumf>, %24, %cst_18 [1] : vector<8x16x384xf32> to vector<8x384xf32>
    %cst_19 = arith.constant 0.000000e+00 : f32
    %26 = vector.broadcast %cst_19 : f32 to vector<8x384xf32>
    %27 = arith.maximumf %25, %26 : vector<8x384xf32>
    %28 = arith.truncf %27 : vector<8x384xf32> to vector<8x384xbf16>
    %c0_20 = arith.constant 0 : index
    %c0_21 = arith.constant 0 : index
    %29 = vector.load %arg8[%c0_20, %c0_21] : memref<8x384xbf16, #tpu.memory_space<vmem>>, vector<8x384xbf16>
    tpu.vector_store %arg8[%c0_20, %c0_21], %28 {strides = array<i32>} : memref<8x384xbf16, #tpu.memory_space<vmem>>, vector<8x384xbf16>,
    return
  }
  func.func @transform_0(%arg0: i32) -> (i32, i32) {
    %c0_i32 = arith.constant 0 : i32
    %c0_i32_0 = arith.constant 0 : i32
    return %arg0, %c0_i32 : i32, i32
  }
  func.func @transform_1(%arg0: i32) -> (i32, i32) {
    %c0_i32 = arith.constant 0 : i32
    %c0_i32_0 = arith.constant 0 : i32
    return %arg0, %c0_i32 : i32, i32
  }
  func.func @transform_2(%arg0: i32) -> (i32, i32) {
    %c0_i32 = arith.constant 0 : i32
    %c0_i32_0 = arith.constant 0 : i32
    return %arg0, %c0_i32 : i32, i32
  }
  func.func @transform_3(%arg0: i32) -> (i32, i32) {
    %c0_i32 = arith.constant 0 : i32
    %c0_i32_0 = arith.constant 0 : i32
    %c0_i32_1 = arith.constant 0 : i32
    return %c0_i32, %c0_i32_0 : i32, i32
  }
  func.func @transform_4(%arg0: i32) -> (i32, i32) {
    %c0_i32 = arith.constant 0 : i32
    %c0_i32_0 = arith.constant 0 : i32
    %c0_i32_1 = arith.constant 0 : i32
    return %c0_i32, %c0_i32_0 : i32, i32
  }
  func.func @transform_5(%arg0: i32) -> (i32, i32) {
    %c0_i32 = arith.constant 0 : i32
    %c0_i32_0 = arith.constant 0 : i32
    %c0_i32_1 = arith.constant 0 : i32
    return %c0_i32, %c0_i32_0 : i32, i32
  }
  func.func @transform_6(%arg0: i32) -> (i32, i32) {
    %c0_i32 = arith.constant 0 : i32
    %c0_i32_0 = arith.constant 0 : i32
    %c0_i32_1 = arith.constant 0 : i32
    return %c0_i32, %c0_i32_0 : i32, i32
  }
  func.func @transform_7(%arg0: i32) -> (i32, i32) {
    %c0_i32 = arith.constant 0 : i32
    %c0_i32_0 = arith.constant 0 : i32
    return %arg0, %c0_i32 : i32, i32
  }
}

</mosaic_0001>

<bundles_post_ra>
// kernel: tpu_custom_call.1
= control target key start
LH: loop header
LB: loop body
LE: loop exit
PB: predicated region body
PF: predicated region fallthrough
CT: control target
= control target key end

     0   :  { %s4558_s0 = inlined_call_operand.hbm [shape: bf16[256,128], index: 0, kind: input, shape index: {}]   ;;  %s4559_s1 = inlined_call_operand.hbm [shape: bf16[256,128], index: 1, kind: input, shape index: {}]   ;;  %s4560_s2 = inlined_call_operand.vmem [shape: f32[256,1], index: 2, kind: input, shape index: {}]   ;;  %s4561_s3 = inlined_call_operand.vmem [shape: bf16[128,384], index: 3, kind: input, shape index: {}]   ;;  %s4562_s4 = inlined_call_operand.vmem [shape: f32[1,384], index: 4, kind: input, shape index: {}]   ;;  %s4563_s5 = inlined_call_operand.hbm [shape: bf16[384,384], index: 5, kind: input, shape index: {}]   ;;  %s4564_s6 = inlined_call_operand.vmem [shape: f32[1,384], index: 6, kind: input, shape index: {}]   ;;  %s4565_s7 = inlined_call_operand.hbm [shape: bf16[16,384], index: 7, kind: output, shape index: {}]  }
   0x1   :  { %4570 = sst [smem:[#allocation21_spill]] %s4558_s0 }
   0x2   :  { %4571 = sst [smem:[#allocation22_spill]] %s4563_s5 }
   0x3   :  { %12 = vsyncpa [#allocation3], 0 }
   0x4   :  { %14 = vsyncpa [#allocation3 + $0x1], 0 }
   0x5   :  { %15 = vsyncpa [#allocation6], 0 }
   0x6   :  { %17 = vsyncpa [#allocation6 + $0x1], 0 }
   0x7   :  { %18 = vsyncpa [#allocation4], 0 }
   0x8   :  { %20 = vsyncpa [#allocation4 + $0x1], 0  ;;  %s3531_s24 = smov 0   ;;  %s3533_s25 = smov 0  }
   0x9   :  { %s3535_s26 = smov 0   ;;  %s3537_s27 = smov 0  }
   0xa LB: > { %4572 = sst [smem:[#allocation13_spill]] %s3479_s26  ;;  %s3552_s28 = sadd.s32 4294967295, %s3483_s27   ;;  %s3483_s27 = sphi %s3537_s27, %s4599_s27   ;;  %s3479_s26 = sphi %s3535_s26, %s4601_s26   ;;  %s3475_s25 = sphi %s3533_s25, %s4603_s25   ;;  %s3471_s24 = sphi %s3531_s24, %s4602_s24  }
   0xb   : > { %s2658_s29 = sadd.s32 4294967294, %s3483_s27   ;;  %p46_p0 = scmp.ne.s32.totalorder %s3475_s25, %s3471_s24 }
   0xc   : > { %p47_p1 = scmp.eq.s32.totalorder %s3552_s28, 0  ;;  %p206_p2 = scmp.eq.s32.totalorder %s3552_s28, 1 }
   0xd   : > { %p212_p3 = scmp.eq.s32.totalorder %s2658_s29, 1  ;;  %p2659_p5 = scmp.ge.s32.totalorder %s3483_s27, 1 }
   0xe   : > { %p3561_p4 = por %p47_p1, %p46_p0  ;;  %p219_p7 = scmp.lt.s32.totalorder %s3483_s27, 3 }
   0xf   : > { %p3566_p6 = por %p212_p3, %p46_p0  ;;  %s4576_s5 = sld [smem:[#allocation22_spill]] }
  0x10   : > { %p3574_p8 = pnand %p2659_p5, %p219_p7  ;;  %s3485_s13 = smov [#allocation7]  }
  0x11   : > { %s4574_s8 = scalar_select %p3566_p6, 1, 0 }
  0x12   : > { %p3251_p9 = pneg %p3574_p8  ;;  %s238_s14 = sshll.u32 %s3485_s13, 4  ;;  %s239_s14 = int_to_ptr.vmem [resolvable:$true] %s238_s14 }
  0x13   : > { %4575 = sst [smem:[#allocation14_spill]] %s4574_s8  ;;  %s3584_s15 = sadd.s32 1, %s3483_s27  }
  0x14   : > { %p3252_p10 = pnand %p3251_p9, %p47_p1  ;;  %4578 = sst [smem:[#allocation15_spill]] %s3584_s15 }
  0x15   : > { %s236_s11 = sshll.u32 %s4576_s5, 4  ;;  %s3486_s16 = smov 192   ;;  %s237_s11 = int_to_ptr.hbm [resolvable:$true] %s236_s11 }
  0x16   : > { %s3487_s17 = smov 12   ;;  %s30_s18 = ssub.s32 %s3483_s27, %s3584_s15 }
  0x17   : > { %3254 = dma.hbm_to_vmem [thread:$0]  (!%p3252_p10), %s237_s11, 9216, %s239_s14, [#allocation6], %s3486_s16, %s3486_s16, %s3487_s17  }
  0x18   : > { %s33_s19 = sadd.s32 1, %s3479_s26  ;;  %p31_p12 = scmp.eq.s32.totalorder %s30_s18, 0 }
  0x19   : > { %p40_p13 = scmp.ne.s32.totalorder %s3479_s26, %s3475_s25  ;;  %p41_p0 = scmp.eq.s32.totalorder %s3483_s27, 0 }
  0x1a   : > { %p3267_p3 = scmp.lt.s32.totalorder %s3483_s27, 2  ;;  %s255_s22 = sand.u32 1, %s3479_s26  }
  0x1b   : > { %s3594_s20 = scalar_select %p31_p12, %s3479_s26, %s33_s19  }
  0x1c   : > { %p42_p5 = por %p41_p0, %p40_p13  ;;  %p3598_p7 = por %p206_p2, %p40_p13 }
  0x1d   : > { %4579 = sst [smem:[#allocation16_spill]] %s3594_s20  ;;  %s3125_s23 = sshll.u32 %s3483_s27, 6 }
  0x1e   : > { %s3604_s29 = sshll.u32 %s255_s22, 6  ;;  %s4581_s0 = sld [smem:[#allocation21_spill]] }
  0x1f   : > { %s259_s14 = scalar_lea.vmem [#allocation2], %s3604_s29  ;;  %p3612_p9 = pnand %p3267_p3, %p42_p5 }
  0x20   : > { %s267_s16 = sshll.u32 %s259_s14, 4  ;;  %s286_s5 = scalar_lea.hbm %s4559_s1, %s3125_s23  ;;  %s268_s16 = int_to_ptr.vmem [resolvable:$true] %s267_s16 }
  0x21   : > { %s256_s20 = scalar_lea.sflag [#allocation3], %s255_s22  ;;  %p3353_p10 = pneg %p3612_p9 }
  0x24   : > { %s264_s11 = scalar_lea.hbm %s4581_s0, %s3125_s23  ;;  %s3356_s26 = scalar_lea.hbm %s4581_s0, 128 }
  0x25   : > { %s265_s13 = sshll.u32 %s264_s11, 4  ;;  %s266_s13 = int_to_ptr.hbm [resolvable:$true] %s265_s13 }
  0x26   : > { %s3349_s9 = sshra.s32 %s266_s13, 4  ;;  %s3350_s9 = int_to_ptr.hbm [resolvable:$true] %s3349_s9 }
  0x27   : > { %s3351_s10 = scalar_lea.hbm %s3350_s9, 64  ;;  %p3357_p0 = scmp.lt.s32.totalorder %s3350_s9, %s4581_s0 }
  0x28   : > { %p3352_p2 = scmp.ne.s32.totalorder %s3350_s9, %s3351_s10  ;;  %p3358_p3 = scmp.lt.s32.totalorder %s3356_s26, %s3351_s10 }
  0x2a   : > { %p3354_p12 = pnand %p3353_p10, %p3352_p2  ;;  %p3359_p5 = por %p3358_p3, %p3357_p0 }
  0x2c   : > { %p3355_p13 = pneg %p3354_p12 }
  0x2e   : > { %p3360_p11 = pnand %p3359_p5, %p3355_p13 }
  0x30   : > { %3363 = shalt.err (!%p3360_p11)
}
  0x31   : > { %s3488_s22 = smov 64   ;;  %s3489_s23 = smov 4  }
  0x32   : > { %3258 = dma.hbm_to_vmem [thread:$0]  (!%p3612_p9), %s266_s13, 1024, %s268_s16, %s256_s20, %s3488_s22, %s3488_s22, %s3489_s23  }
  0x33   : > { %s287_s19 = sshll.u32 %s286_s5, 4  ;;  %s281_s8 = scalar_lea.vmem [#allocation5], %s3604_s29  ;;  %s288_s19 = int_to_ptr.hbm [resolvable:$true] %s287_s19 }
  0x34   : > { %s289_s11 = sshll.u32 %s281_s8, 4  ;;  %s277_s14 = sand.u32 1, %s3483_s27   ;;  %s290_s11 = int_to_ptr.vmem [resolvable:$true] %s289_s11 }
  0x35   : > { %s278_s15 = scalar_lea.sflag [#allocation6], %s277_s14  ;;  %s3379_s9 = sshra.s32 %s288_s19, 4  ;;  %s3380_s9 = int_to_ptr.hbm [resolvable:$true] %s3379_s9 }
  0x36   : > { %s3381_s26 = scalar_lea.hbm %s3380_s9, 64  ;;  %s3386_s0 = scalar_lea.hbm %s4559_s1, 128 }
  0x37   : > { %p3382_p2 = scmp.ne.s32.totalorder %s3380_s9, %s3381_s26  ;;  %p3387_p13 = scmp.lt.s32.totalorder %s3380_s9, %s4559_s1 }
  0x38   : > { %p3388_p0 = scmp.lt.s32.totalorder %s3386_s0, %s3381_s26 }
  0x39   : > { %p3384_p11 = pnand %p3382_p2, %p3353_p10 }
  0x3a   : > { %p3389_p3 = por %p3388_p0, %p3387_p13 }
  0x3b   : > { %p3385_p12 = pneg %p3384_p11 }
  0x3d   : > { %p3390_p5 = pnand %p3389_p3, %p3385_p12 }
  0x3f   : > { %3393 = shalt.err (!%p3390_p5)
}
  0x40   : > { %3261 = dma.hbm_to_vmem [thread:$0]  (!%p3612_p9), %s288_s19, 1024, %s290_s11, %s278_s15, %s3488_s22, %s3488_s22, %s3489_s23  }
  0x41   : > { %310 = sbr.rel (%p3574_p8) target bundleno = 1208 (0x4b8), region = 48 }
  0x46   : > { %s3648_s8 = sand.u32 1, %s3475_s25  }
  0x47   : > { %s2669_s29 = sshll.u32 %s3648_s8, 6  ;;  %s313_s13 = scalar_lea.sflag [#allocation3], %s3648_s8 }
  0x48   : > { %s3652_s16 = scalar_lea.vmem [#allocation2], %s2669_s29 }
  0x49   : > { %3454 = dma.done.wait (%p3561_p4), %s313_s13, 1024  }
  0x4a   : > { %3456 = vsyncadd (%p3561_p4), %s313_s13, 4294966272  ;;  %s322_s0 = sand.u32 1, %s3552_s28   ;;  %s326_s17 = scalar_lea.vmem [#allocation5], %s2669_s29 }
  0x4b   : > { %s323_s12 = scalar_lea.sflag [#allocation6], %s322_s0 }
  0x4c   : > { %3458 = dma.done.wait (%p3561_p4), %s323_s12, 1024  }
  0x4d   : > { %3460 = vsyncadd (%p3561_p4), %s323_s12, 4294966272 }
  0x4e   : > { %3462 = dma.done.wait (%p47_p1), [#allocation6], 9216  }
  0x4f   : > { %3464 = vsyncadd (%p47_p1), [#allocation6], 4294958080  ;;  %v3142_v0 = vld [vmem:[%s326_s17 + $0x38] sm:$0xff]  ;;  %v3141_v1 = vld [vmem:[%s326_s17 + $0x30] sm:$0xff]  ;;  %vm2493_vm0 = vcmask 1041409   ;;  %vm2495_vm1 = vcmask 1042434  }
  0x50   : > { %509 = vmatpush.bf16.msra.mxu0 %v3142_v0  ;;  %v3140_v2 = vld [vmem:[%s326_s17 + $0x28] sm:$0xff]  ;;  %v3139_v3 = vld [vmem:[%s326_s17 + $0x20] sm:$0xff]  ;;  %v3138_v4 = vld [vmem:[%s326_s17 + $0x18] sm:$0xff]  ;;  %vm2497_vm2 = vcmask 1043459   ;;  %vm2499_vm3 = vcmask 1044484   ;;  %vm2501_vm4 = vcmask 1045509  }
  0x51   : > { %v3137_v5 = vld [vmem:[%s326_s17 + $0x10] sm:$0xff]  ;;  %v3136_v6 = vld [vmem:[%s326_s17 + $0x8] sm:$0xff]  ;;  %v3135_v7 = vld [vmem:[%s326_s17] sm:$0xff]  ;;  %vm2503_vm5 = vcmask 1046534   ;;  %s3239_s13 = smul.u32 12, %s3648_s8  ;;  %vm2505_vm6 = vcmask 1047559  }
  0x52   : > { %v3127_v8 = vld [vmem:[%s3652_s16] sm:$0xff]  ;;  %v3128_v9 = vld [vmem:[%s3652_s16 + $0x8] sm:$0xff]  ;;  %v3129_v10 = vld [vmem:[%s3652_s16 + $0x10] sm:$0xff]  ;;  %s3240_s12 = smul.u32 12, %s3552_s28  ;;  %s2528_s11 = scalar_lea.sflag [#allocation4], %s3648_s8 }
  0x53   : > { %v3130_v11 = vld [vmem:[%s3652_s16 + $0x18] sm:$0xff]  ;;  %v3131_v12 = vld [vmem:[%s3652_s16 + $0x20] sm:$0xff]  ;;  %v2824_v13 = vld [vmem:[%s4561_s3 + $0xa8] sm:$0xf]  ;;  %s4493_s0 = scalar_lea.vmem [#allocation8], %s3239_s13 }
  0x54   : > { %510 = vmatpush.bf16.msra.mxu0 %v3141_v1  ;;  %v3165_v14 = vld [vmem:[%s4561_s3 + $0xb0] sm:$0xf0]  ;;  %v3164_v15 = vld [vmem:[%s4561_s3 + $0xac] sm:$0xf]  ;;  %v2826_v17 = vld [vmem:[%s4561_s3 + $0xb4] sm:$0xf0]  ;;  %s2539_s22 = scalar_lea.hbm %s4565_s7, %s3240_s12 }
  0x55   : > { %v2825_v16 = vor.u32 %v3165_v14, %v2824_v13  ;;  %v2832_v18 = vld [vmem:[%s4561_s3 + $0xb0] sm:$0xf]  ;;  %v3166_v19 = vld [vmem:[%s4561_s3 + $0xb8] sm:$0xf0]  ;;  %v2829_v20 = vor.u32 %v3164_v15, %v2826_v17  ;;  %v3161_v24 = vld [vmem:[%s4561_s3 + $0x94] sm:$0xf] }
  0x56   : > { %v2833_v21 = vor.u32 %v3166_v19, %v2832_v18  ;;  %v2812_v22 = vld [vmem:[%s4561_s3 + $0x90] sm:$0xf]  ;;  %v3162_v23 = vld [vmem:[%s4561_s3 + $0x98] sm:$0xf0]  ;;  %v2814_v26 = vld [vmem:[%s4561_s3 + $0x9c] sm:$0xf0] }
  0x57   : > { %734 = vmatpush.bf16.msra.mxu1 %v2825_v16  ;;  %v2813_v25 = vor.u32 %v3162_v23, %v2812_v22  ;;  %v2820_v27 = vld [vmem:[%s4561_s3 + $0x98] sm:$0xf]  ;;  %v3163_v28 = vld [vmem:[%s4561_s3 + $0xa0] sm:$0xf0]  ;;  %783 = vmatpush.bf16.msra.mxu2 %v2829_v20  ;;  %v2817_v29 = vor.u32 %v3161_v24, %v2814_v26  ;;  %v3132_v31 = vld [vmem:[%s3652_s16 + $0x28] sm:$0xff]  ;;  %s2541_s23 = sshll.u32 %s4493_s0, 4  ;;  %s2542_s23 = int_to_ptr.vmem [resolvable:$true] %s2541_s23 }
  0x58   : > { %511 = vmatpush.bf16.msra.mxu0 %v3140_v2  ;;  %832 = vmatpush.bf16.msra.mxu3 %v2833_v21  ;;  %v2821_v30 = vor.u32 %v3163_v28, %v2820_v27  ;;  %v2800_v32 = vld [vmem:[%s4561_s3 + $0x78] sm:$0xf]  ;;  %v3159_v33 = vld [vmem:[%s4561_s3 + $0x80] sm:$0xf0]  ;;  %v3158_v34 = vld [vmem:[%s4561_s3 + $0x7c] sm:$0xf] }
  0x59   : > { %v2801_v35 = vor.u32 %v3159_v33, %v2800_v32  ;;  %v2802_v36 = vld [vmem:[%s4561_s3 + $0x84] sm:$0xf0]  ;;  %v2808_v37 = vld [vmem:[%s4561_s3 + $0x80] sm:$0xf]  ;;  %v3160_v38 = vld [vmem:[%s4561_s3 + $0x88] sm:$0xf0] }
  0x5a   : > { %v2805_v39 = vor.u32 %v3158_v34, %v2802_v36  ;;  %v2809_v40 = vor.u32 %v3160_v38, %v2808_v37  ;;  %v2788_v41 = vld [vmem:[%s4561_s3 + $0x60] sm:$0xf]  ;;  %v3156_v42 = vld [vmem:[%s4561_s3 + $0x68] sm:$0xf0]  ;;  %v3155_v43 = vld [vmem:[%s4561_s3 + $0x64] sm:$0xf] }
  0x5b   : > { %735 = vmatpush.bf16.msra.mxu1 %v2813_v25  ;;  %784 = vmatpush.bf16.msra.mxu2 %v2817_v29  ;;  %v2789_v44 = vor.u32 %v3156_v42, %v2788_v41  ;;  %v2790_v45 = vld [vmem:[%s4561_s3 + $0x6c] sm:$0xf0]  ;;  %v2796_v46 = vld [vmem:[%s4561_s3 + $0x68] sm:$0xf]  ;;  %v3157_v47 = vld [vmem:[%s4561_s3 + $0x70] sm:$0xf0] }
  0x5c   : > { %512 = vmatpush.bf16.msra.mxu0 %v3139_v3  ;;  %833 = vmatpush.bf16.msra.mxu3 %v2821_v30  ;;  %v2793_v48 = vor.u32 %v3155_v43, %v2790_v45  ;;  %v2797_v49 = vor.u32 %v3157_v47, %v2796_v46  ;;  %v2776_v50 = vld [vmem:[%s4561_s3 + $0x48] sm:$0xf]  ;;  %v3153_v51 = vld [vmem:[%s4561_s3 + $0x50] sm:$0xf0]  ;;  %v3152_v52 = vld [vmem:[%s4561_s3 + $0x4c] sm:$0xf] }
  0x5d   : > { %v2778_v53 = vld [vmem:[%s4561_s3 + $0x54] sm:$0xf0]  ;;  %v2784_v54 = vld [vmem:[%s4561_s3 + $0x50] sm:$0xf]  ;;  %v3154_v55 = vld [vmem:[%s4561_s3 + $0x58] sm:$0xf0]  ;;  %v2777_v56 = vor.u32 %v3153_v51, %v2776_v50 }
  0x5e   : > { %v2781_v57 = vor.u32 %v3152_v52, %v2778_v53  ;;  %v2785_v58 = vor.u32 %v3154_v55, %v2784_v54  ;;  %v2764_v59 = vld [vmem:[%s4561_s3 + $0x30] sm:$0xf]  ;;  %v3150_v60 = vld [vmem:[%s4561_s3 + $0x38] sm:$0xf0]  ;;  %v3149_v61 = vld [vmem:[%s4561_s3 + $0x34] sm:$0xf] }
  0x5f   : > { %736 = vmatpush.bf16.msra.mxu1 %v2801_v35  ;;  %785 = vmatpush.bf16.msra.mxu2 %v2805_v39  ;;  %v2765_v62 = vor.u32 %v3150_v60, %v2764_v59  ;;  %v2766_v63 = vld [vmem:[%s4561_s3 + $0x3c] sm:$0xf0]  ;;  %v2772_v0 = vld [vmem:[%s4561_s3 + $0x38] sm:$0xf]  ;;  %v3151_v1 = vld [vmem:[%s4561_s3 + $0x40] sm:$0xf0] }
  0x60   : > { %513 = vmatpush.bf16.msra.mxu0 %v3138_v4  ;;  %834 = vmatpush.bf16.msra.mxu3 %v2809_v40  ;;  %v3133_v2 = vld [vmem:[%s3652_s16 + $0x30] sm:$0xff]  ;;  %v2769_v3 = vor.u32 %v3149_v61, %v2766_v63  ;;  %v2773_v4 = vor.u32 %v3151_v1, %v2772_v0  ;;  %v2740_v14 = vld [vmem:[%s4561_s3] sm:$0xf]  ;;  %v3144_v15 = vld [vmem:[%s4561_s3 + $0x8] sm:$0xf0]  ;;  %s2543_s19 = sshll.u32 %s2539_s22, 4  ;;  %s2544_s19 = int_to_ptr.hbm [resolvable:$true] %s2543_s19 }
  0x61   : > { %v3143_v16 = vld [vmem:[%s4561_s3 + $0x4] sm:$0xf]  ;;  %v2741_v17 = vor.u32 %v3144_v15, %v2740_v14  ;;  %v2742_v18 = vld [vmem:[%s4561_s3 + $0xc] sm:$0xf0]  ;;  %v2748_v19 = vld [vmem:[%s4561_s3 + $0x8] sm:$0xf] }
  0x62   : > { %v3145_v20 = vld [vmem:[%s4561_s3 + $0x10] sm:$0xf0]  ;;  %v2745_v21 = vor.u32 %v3143_v16, %v2742_v18  ;;  %v3134_v23 = vld [vmem:[%s3652_s16 + $0x38] sm:$0xff]  ;;  %v2920_v40 = vld [vmem:[#allocation7 + $0xa8] sm:$0xf]  ;;  %s3423_s14 = sshra.s32 %s2544_s19, 4  ;;  %s3424_s14 = int_to_ptr.hbm [resolvable:$true] %s3423_s14 }
  0x63   : > { %737 = vmatpush.bf16.msra.mxu1 %v2789_v44  ;;  %786 = vmatpush.bf16.msra.mxu2 %v2793_v48  ;;  %v2749_v22 = vor.u32 %v3145_v20, %v2748_v19  ;;  %v3189_v41 = vld [vmem:[#allocation7 + $0xb0] sm:$0xf0]  ;;  %v3188_v42 = vld [vmem:[#allocation7 + $0xac] sm:$0xf]  ;;  %v2922_v44 = vld [vmem:[#allocation7 + $0xb4] sm:$0xf0]  ;;  %p3430_p10 = scmp.lt.s32.totalorder %s3424_s14, %s4565_s7 }
  0x64   : > { %514 = vmatpush.bf16.msra.mxu0 %v3137_v5  ;;  %835 = vmatpush.bf16.msra.mxu3 %v2797_v49  ;;  %v2752_v5 = vld [vmem:[%s4561_s3 + $0x18] sm:$0xf]  ;;  %v2921_v43 = vor.u32 %v3189_v41, %v2920_v40  ;;  %v2925_v46 = vor.u32 %v3188_v42, %v2922_v44  ;;  %v2908_v48 = vld [vmem:[#allocation7 + $0x90] sm:$0xf]  ;;  %v3186_v49 = vld [vmem:[#allocation7 + $0x98] sm:$0xf0] }
  0x65   : > { %v3185_v50 = vld [vmem:[#allocation7 + $0x94] sm:$0xf]  ;;  %v2909_v51 = vor.u32 %v3186_v49, %v2908_v48  ;;  %v2910_v52 = vld [vmem:[#allocation7 + $0x9c] sm:$0xf0]  ;;  %v3016_v54 = vld [vmem:[#allocation7 + $0x168] sm:$0xf] }
  0x66   : > { %v2913_v53 = vor.u32 %v3185_v50, %v2910_v52  ;;  %v3213_v55 = vld [vmem:[#allocation7 + $0x170] sm:$0xf0]  ;;  %v2896_v59 = vld [vmem:[#allocation7 + $0x78] sm:$0xf]  ;;  %v3183_v60 = vld [vmem:[#allocation7 + $0x80] sm:$0xf0] }
  0x67   : > { %738 = vmatpush.bf16.msra.mxu1 %v2777_v56  ;;  %787 = vmatpush.bf16.msra.mxu2 %v2781_v57  ;;  %v3112_v56 = vld [vmem:[#allocation7 + $0x228] sm:$0xf]  ;;  %v3017_v57 = vor.u32 %v3213_v55, %v3016_v54  ;;  %v3182_v63 = vld [vmem:[#allocation7 + $0x7c] sm:$0xf]  ;;  %v3004_v1 = vld [vmem:[#allocation7 + $0x150] sm:$0xf] }
  0x68   : > { %515 = vmatpush.bf16.msra.mxu0 %v3136_v6  ;;  %836 = vmatpush.bf16.msra.mxu3 %v2785_v58  ;;  %v3147_v6 = vld [vmem:[%s4561_s3 + $0x20] sm:$0xf0]  ;;  %v3237_v58 = vld [vmem:[#allocation7 + $0x230] sm:$0xf0]  ;;  %v2898_v0 = vld [vmem:[#allocation7 + $0x84] sm:$0xf0] }
  0x69   : > { %v3113_v61 = vor.u32 %v3237_v58, %v3112_v56  ;;  %v2992_v14 = vld [vmem:[#allocation7 + $0x138] sm:$0xf]  ;;  %v3207_v15 = vld [vmem:[#allocation7 + $0x140] sm:$0xf0]  ;;  %v2968_v41 = vld [vmem:[#allocation7 + $0x108] sm:$0xf] }
  0x6a   : > { %v3231_v18 = vld [vmem:[#allocation7 + $0x200] sm:$0xf0]  ;;  %v2993_v19 = vor.u32 %v3207_v15, %v2992_v14  ;;  %v3201_v42 = vld [vmem:[#allocation7 + $0x110] sm:$0xf0]  ;;  %v3170_v50 = vld [vmem:[#allocation7 + $0x1c] sm:$0xf] }
  0x6b   : > { %739 = vmatpush.bf16.msra.mxu1 %v2765_v62  ;;  %788 = vmatpush.bf16.msra.mxu2 %v2769_v3  ;;  %v2897_v62 = vor.u32 %v3183_v60, %v2896_v59  ;;  %v3210_v3 = vld [vmem:[#allocation7 + $0x158] sm:$0xf0]  ;;  %v2969_v44 = vor.u32 %v3201_v42, %v2968_v41  ;;  %v3171_v48 = vld [vmem:[#allocation7 + $0x20] sm:$0xf0]  ;;  %v2956_v54 = vld [vmem:[#allocation7 + $0xf0] sm:$0xf] }
  0x6c   : > { %516 = vmatpush.bf16.msra.mxu0 %v3135_v7  ;;  %v3146_v7 = vld [vmem:[%s4561_s3 + $0x1c] sm:$0xf]  ;;  %837 = vmatpush.bf16.msra.mxu3 %v2773_v4  ;;  %v3100_v4 = vld [vmem:[#allocation7 + $0x210] sm:$0xf]  ;;  %v2836_v60 = vld [vmem:[#allocation7] sm:$0xf] }
  0x6d   : > { %v3198_v55 = vld [vmem:[#allocation7 + $0xf8] sm:$0xf0]  ;;  %v3052_v56 = vld [vmem:[#allocation7 + $0x1b0] sm:$0xf]  ;;  %v3216_v14 = vld [vmem:[#allocation7 + $0x188] sm:$0xf0] }
  0x6e   : > { %v3222_v58 = vld [vmem:[#allocation7 + $0x1b8] sm:$0xf0] }
  0x6f   : > { %517 = vmatmul.bf16.vlgmr.msra.gmra.mxu0 %v3127_v8  ;;  %v2753_v8 = vor.u32 %v3147_v6, %v2752_v5  ;;  %v3234_v5 = vld [vmem:[#allocation7 + $0x218] sm:$0xf0]  ;;  %v3053_v59 = vor.u32 %v3222_v58, %v3052_v56 }
  0x70   : > { %1433 = vmatpush.bf16.msrb.mxu0 %v2921_v43  ;;  %v3064_v43 = vld [vmem:[#allocation7 + $0x1c8] sm:$0xf] }
  0x71   : > { %740 = vmatpush.bf16.msra.mxu1 %v2753_v8  ;;  %v3101_v8 = vor.u32 %v3234_v5, %v3100_v4  ;;  %v3040_v4 = vld [vmem:[#allocation7 + $0x198] sm:$0xf] }
  0x74   : > { %1434 = vmatpush.bf16.msrb.mxu0 %v2909_v51  ;;  %v2850_v51 = vld [vmem:[#allocation7 + $0x24] sm:$0xf0] }
  0x75   : > { %741 = vmatpush.bf16.msra.mxu1 %v2741_v17  ;;  %v3088_v17 = vld [vmem:[#allocation7 + $0x1f8] sm:$0xf] }
  0x76   : > { %v3089_v20 = vor.u32 %v3231_v18, %v3088_v17 }
  0x78   : > { %1435 = vmatpush.bf16.msrb.mxu0 %v2897_v62  ;;  %v3167_v62 = vld [vmem:[#allocation7 + $0x4] sm:$0xf] }
  0x79   : > { %1482 = vmatpush.bf16.msrb.mxu1 %v3017_v57  ;;  %v2957_v57 = vor.u32 %v3198_v55, %v2956_v54 }
  0x7f   : > { %522 = vmatmul.bf16.gmra.mxu0 %v3128_v9  ;;  %v2754_v9 = vld [vmem:[%s4561_s3 + $0x24] sm:$0xf0] }
  0x8f   : > { %527 = vmatmul.bf16.gmra.mxu0 %v3129_v10  ;;  %v2760_v10 = vld [vmem:[%s4561_s3 + $0x20] sm:$0xf] }
  0x9f   : > { %532 = vmatmul.bf16.gmra.mxu0 %v3130_v11  ;;  %v3148_v11 = vld [vmem:[%s4561_s3 + $0x28] sm:$0xf0] }
  0xa0   : > { %v2761_v13 = vor.u32 %v3148_v11, %v2760_v10  ;;  %v3180_v10 = vld [vmem:[#allocation7 + $0x68] sm:$0xf0]  ;;  %v3179_v11 = vld [vmem:[#allocation7 + $0x64] sm:$0xf] }
  0xa2   : > { %838 = vmatpush.bf16.msra.mxu3 %v2761_v13  ;;  %v2886_v13 = vld [vmem:[#allocation7 + $0x6c] sm:$0xf0] }
  0xa3   : > { %v2889_v16 = vor.u32 %v3179_v11, %v2886_v13  ;;  %v3028_v11 = vld [vmem:[#allocation7 + $0x180] sm:$0xf] }
  0xa4   : > { %v3029_v15 = vor.u32 %v3216_v14, %v3028_v11 }
  0xa6   : > { %839 = vmatpush.bf16.msra.mxu3 %v2749_v22  ;;  %v3177_v22 = vld [vmem:[#allocation7 + $0x50] sm:$0xf0] }
  0xaa   : > { %1580 = vmatpush.bf16.msrb.mxu3 %v2925_v46 }
  0xae   : > { %1581 = vmatpush.bf16.msrb.mxu3 %v2913_v53  ;;  %v2853_v53 = vor.u32 %v3170_v50, %v2850_v51 }
  0xaf   : > { %537 = vmatmul.bf16.gmra.mxu0 %v3131_v12  ;;  %v2757_v12 = vor.u32 %v3146_v7, %v2754_v9  ;;  %v3005_v7 = vor.u32 %v3210_v3, %v3004_v1  ;;  %v2884_v9 = vld [vmem:[#allocation7 + $0x60] sm:$0xf]  ;;  %v3195_v3 = vld [vmem:[#allocation7 + $0xe0] sm:$0xf0] }
  0xb1   : > { %789 = vmatpush.bf16.msra.mxu2 %v2757_v12  ;;  %v2885_v12 = vor.u32 %v3180_v10, %v2884_v9  ;;  %1483 = vmatpush.bf16.msrb.mxu1 %v3005_v7  ;;  %v2932_v9 = vld [vmem:[#allocation7 + $0xc0] sm:$0xf]  ;;  %v3192_v10 = vld [vmem:[#allocation7 + $0xc8] sm:$0xf0] }
  0xb2   : > { %v2933_v13 = vor.u32 %v3192_v10, %v2932_v9 }
  0xb3   : > { %1436 = vmatpush.bf16.msrb.mxu0 %v2885_v12 }
  0xb5   : > { %790 = vmatpush.bf16.msra.mxu2 %v2745_v21  ;;  %v2872_v21 = vld [vmem:[#allocation7 + $0x48] sm:$0xf]  ;;  %1484 = vmatpush.bf16.msrb.mxu1 %v2993_v19 }
  0xb9   : > { %1531 = vmatpush.bf16.msrb.mxu2 %v3113_v61  ;;  %v3168_v61 = vld [vmem:[#allocation7 + $0x8] sm:$0xf0] }
  0xbd   : > { %1532 = vmatpush.bf16.msrb.mxu2 %v3101_v8 }
  0xbf   : > { %542 = vmatmul.bf16.gmra.mxu0 %v3132_v31 }
  0xc1   : > { %1533 = vmatpush.bf16.msrb.mxu2 %v3089_v20 }
  0xcf   : > { %547 = vmatmul.bf16.gmra.mxu0 %v3133_v2  ;;  %v2901_v2 = vor.u32 %v3182_v63, %v2898_v0  ;;  %v2837_v63 = vor.u32 %v3168_v61, %v2836_v60  ;;  %v2838_v0 = vld [vmem:[#allocation7 + $0xc] sm:$0xf0] }
  0xd0   : > { %v2841_v1 = vor.u32 %v3167_v62, %v2838_v0 }
  0xd1   : > { %1582 = vmatpush.bf16.msrb.mxu3 %v2901_v2  ;;  %v2944_v2 = vld [vmem:[#allocation7 + $0xd8] sm:$0xf] }
  0xd2   : > { %v2945_v5 = vor.u32 %v3195_v3, %v2944_v2 }
  0xd5   : > { %1583 = vmatpush.bf16.msrb.mxu3 %v2889_v16  ;;  %v598_v16 = vld [vmem:[%s4562_s4] sm:$0x7] }
  0xd6   : > { %v3822_v18 = vperm.slane %v598_v16, 0 }
  0xdf   : > { %552 = vmatmul.bf16.gmra.mxu0 %v3134_v23  ;;  %v3176_v23 = vld [vmem:[#allocation7 + $0x4c] sm:$0xf] }
  0xec   : > { %v518_v24 = vpop.f32.mrf.mxu0 }
  0xf4   : > { %v520_v25 = vpop.f32.mrf.mxu0 }
  0xf5   : > { %v558_v26 = vpack.c.bf16 %v520_v25, %v518_v24  ;;  %v2873_v24 = vor.u32 %v3177_v22, %v2872_v21  ;;  %v2874_v25 = vld [vmem:[#allocation7 + $0x54] sm:$0xf0] }
  0xf7   : > { %742 = vmatmul.bf16.vlgmr.msra.gmra.mxu1 %v558_v26  ;;  %791 = vmatmul.bf16.vlgmr.msra.gmra.mxu2 %v558_v26 }
  0xf8   : > { %840 = vmatmul.bf16.vlgmr.msra.gmra.mxu3 %v558_v26  ;;  %1437 = vmatpush.bf16.msrb.mxu0 %v2873_v24 }
  0xfc   : > { %v523_v27 = vpop.f32.mrf.mxu0 }
 0x104   : > { %v525_v28 = vpop.f32.mrf.mxu0 }
 0x105   : > { %v559_v29 = vpack.c.bf16 %v525_v28, %v523_v27  ;;  %v2877_v27 = vor.u32 %v3176_v23, %v2874_v25  ;;  %v2980_v28 = vld [vmem:[#allocation7 + $0x120] sm:$0xf]  ;;  %v3825_v23 = vperm.slane %v598_v16, 1  ;;  %v3828_v25 = vperm.slane %v598_v16, 2 }
 0x107   : > { %747 = vmatmul.bf16.gmra.mxu1 %v559_v29  ;;  %796 = vmatmul.bf16.gmra.mxu2 %v559_v29 }
 0x108   : > { %845 = vmatmul.bf16.gmra.mxu3 %v559_v29  ;;  %v3204_v29 = vld [vmem:[#allocation7 + $0x128] sm:$0xf0] }
 0x109   : > { %1584 = vmatpush.bf16.msrb.mxu3 %v2877_v27 }
 0x10c   : > { %v528_v30 = vpop.f32.mrf.mxu0 }
 0x114   : > { %v530_v31 = vpop.f32.mrf.mxu0 }
 0x115   : > { %v560_v32 = vpack.c.bf16 %v530_v31, %v528_v30  ;;  %v3076_v30 = vld [vmem:[#allocation7 + $0x1e0] sm:$0xf] }
 0x117   : > { %752 = vmatmul.bf16.gmra.mxu1 %v560_v32  ;;  %801 = vmatmul.bf16.gmra.mxu2 %v560_v32 }
 0x118   : > { %850 = vmatmul.bf16.gmra.mxu3 %v560_v32  ;;  %v2981_v32 = vor.u32 %v3204_v29, %v2980_v28 }
 0x11a   : > { %1485 = vmatpush.bf16.msrb.mxu1 %v2981_v32 }
 0x11c   : > { %v533_v33 = vpop.f32.mrf.mxu0 }
 0x11e   : > { %1486 = vmatpush.bf16.msrb.mxu1 %v2969_v44 }
 0x122   : > { %1487 = vmatpush.bf16.msrb.mxu1 %v2957_v57 }
 0x124   : > { %v535_v34 = vpop.f32.mrf.mxu0 }
 0x125   : > { %v561_v35 = vpack.c.bf16 %v535_v34, %v533_v33  ;;  %v3228_v33 = vld [vmem:[#allocation7 + $0x1e8] sm:$0xf0] }
 0x126   : > { %v3077_v34 = vor.u32 %v3228_v33, %v3076_v30  ;;  %1488 = vmatpush.bf16.msrb.mxu1 %v2945_v5 }
 0x127   : > { %757 = vmatmul.bf16.gmra.mxu1 %v561_v35  ;;  %806 = vmatmul.bf16.gmra.mxu2 %v561_v35 }
 0x128   : > { %855 = vmatmul.bf16.gmra.mxu3 %v561_v35  ;;  %v2860_v35 = vld [vmem:[#allocation7 + $0x30] sm:$0xf]  ;;  %1534 = vmatpush.bf16.msrb.mxu2 %v3077_v34 }
 0x12a   : > { %1489 = vmatpush.bf16.msrb.mxu1 %v2933_v13 }
 0x12c   : > { %v538_v36 = vpop.f32.mrf.mxu0 }
 0x134   : > { %v540_v37 = vpop.f32.mrf.mxu0 }
 0x135   : > { %v562_v38 = vpack.c.bf16 %v540_v37, %v538_v36  ;;  %v3174_v36 = vld [vmem:[#allocation7 + $0x38] sm:$0xf0]  ;;  %v3173_v37 = vld [vmem:[#allocation7 + $0x34] sm:$0xf] }
 0x137   : > { %762 = vmatmul.bf16.gmra.mxu1 %v562_v38  ;;  %811 = vmatmul.bf16.gmra.mxu2 %v562_v38 }
 0x138   : > { %860 = vmatmul.bf16.gmra.mxu3 %v562_v38  ;;  %v2861_v38 = vor.u32 %v3174_v36, %v2860_v35 }
 0x13a   : > { %1438 = vmatpush.bf16.msrb.mxu0 %v2861_v38 }
 0x13c   : > { %v543_v39 = vpop.f32.mrf.mxu0 }
 0x144   : > { %v545_v45 = vpop.f32.mrf.mxu0 }
 0x145   : > { %v563_v47 = vpack.c.bf16 %v545_v45, %v543_v39  ;;  %v2862_v39 = vld [vmem:[#allocation7 + $0x3c] sm:$0xf0]  ;;  %v3225_v45 = vld [vmem:[#allocation7 + $0x1d0] sm:$0xf0] }
 0x146   : > { %v2865_v40 = vor.u32 %v3173_v37, %v2862_v39  ;;  %v3065_v46 = vor.u32 %v3225_v45, %v3064_v43 }
 0x147   : > { %767 = vmatmul.bf16.gmra.mxu1 %v563_v47  ;;  %816 = vmatmul.bf16.gmra.mxu2 %v563_v47 }
 0x148   : > { %865 = vmatmul.bf16.gmra.mxu3 %v563_v47  ;;  %v2848_v47 = vld [vmem:[#allocation7 + $0x18] sm:$0xf]  ;;  %1535 = vmatpush.bf16.msrb.mxu2 %v3065_v46 }
 0x149   : > { %1585 = vmatpush.bf16.msrb.mxu3 %v2865_v40  ;;  %v2849_v49 = vor.u32 %v3171_v48, %v2848_v47 }
 0x14b   : > { %1439 = vmatpush.bf16.msrb.mxu0 %v2849_v49 }
 0x14c   : > { %v548_v6 = vpop.f32.mrf.mxu0  ;;  %1536 = vmatpush.bf16.msrb.mxu2 %v3053_v59 }
 0x14d   : > { %1586 = vmatpush.bf16.msrb.mxu3 %v2853_v53 }
 0x14f   : > { %1440 = vmatpush.bf16.msrb.mxu0 %v2837_v63 }
 0x151   : > { %1587 = vmatpush.bf16.msrb.mxu3 %v2841_v1 }
 0x154   : > { %v550_v26 = vpop.f32.mrf.mxu0 }
 0x155   : > { %v564_v31 = vpack.c.bf16 %v550_v26, %v548_v6  ;;  %v3219_v6 = vld [vmem:[#allocation7 + $0x1a0] sm:$0xf0] }
 0x156   : > { %v3041_v7 = vor.u32 %v3219_v6, %v3040_v4 }
 0x157   : > { %772 = vmatmul.bf16.gmra.mxu1 %v564_v31  ;;  %821 = vmatmul.bf16.gmra.mxu2 %v564_v31 }
 0x158   : > { %870 = vmatmul.bf16.gmra.mxu3 %v564_v31  ;;  %1537 = vmatpush.bf16.msrb.mxu2 %v3041_v7 }
 0x15c   : > { %v553_v52 = vpop.f32.mrf.mxu0  ;;  %1538 = vmatpush.bf16.msrb.mxu2 %v3029_v15 }
 0x164   : > { %v555_v8 = vpop.f32.mrf.mxu0 }
 0x165   : > { %v565_v12 = vpack.c.bf16 %v555_v8, %v553_v52 }
 0x167   : > { %777 = vmatmul.bf16.gmra.mxu1 %v565_v12  ;;  %826 = vmatmul.bf16.gmra.mxu2 %v565_v12 }
 0x168   : > { %875 = vmatmul.bf16.gmra.mxu3 %v565_v12 }
 0x174   : > { %v743_v17 = vpop.f32.mrf.mxu1 }
 0x175   : > { %v744_v20 = vadd.f32 %v743_v17, %v3822_v18 }
 0x177   : > { %v881_v26 = vmax.f32 %v744_v20, 0.0 }
 0x17a   : > { %v792_v19 = vpop.f32.mrf.mxu2 }
 0x17b   : > { %v841_v21 = vpop.f32.mrf.mxu3  ;;  %v793_v28 = vadd.f32 %v792_v19, %v3825_v23 }
 0x17c   : > { %v745_v22 = vpop.f32.mrf.mxu1  ;;  %v842_v30 = vadd.f32 %v841_v21, %v3828_v25 }
 0x17d   : > { %v746_v24 = vadd.f32 %v745_v22, %v3822_v18  ;;  %v882_v36 = vmax.f32 %v793_v28, 0.0 }
 0x17e   : > { %v883_v38 = vmax.f32 %v842_v30, 0.0 }
 0x17f   : > { %v884_v27 = vmax.f32 %v746_v24, 0.0 }
 0x181   : > { %v3831_v29 = vpack.c.bf16 %v884_v27, %v881_v26 }
 0x182   : > { %v794_v31 = vpop.f32.mrf.mxu2 }
 0x183   : > { %v795_v32 = vadd.f32 %v794_v31, %v3825_v23  ;;  %v843_v33 = vpop.f32.mrf.mxu3  ;;  %1441 = vmatmul.bf16.vlgmr.msrb.gmra.mxu0 %v3831_v29  ;;  %1588 = vmatmul.bf16.vlgmr.msrb.gmra.mxu3 %v3831_v29 }
 0x184   : > { %v844_v34 = vadd.f32 %v843_v33, %v3828_v25  ;;  %v748_v35 = vpop.f32.mrf.mxu1 }
 0x185   : > { %v885_v37 = vmax.f32 %v795_v32, 0.0  ;;  %v749_v43 = vadd.f32 %v748_v35, %v3822_v18 }
 0x186   : > { %v886_v39 = vmax.f32 %v844_v34, 0.0 }
 0x187   : > { %v3838_v40 = vpack.c.bf16 %v885_v37, %v882_v36  ;;  %v887_v47 = vmax.f32 %v749_v43, 0.0 }
 0x188   : > { %v3840_v41 = vpack.c.bf16 %v886_v39, %v883_v38 }
 0x189   : > { %1490 = vmatmul.bf16.vlgmr.msrb.gmra.mxu1 %v3838_v40 }
 0x18a   : > { %1539 = vmatmul.bf16.vlgmr.msrb.gmra.mxu2 %v3840_v41  ;;  %v797_v42 = vpop.f32.mrf.mxu2 }
 0x18b   : > { %v846_v44 = vpop.f32.mrf.mxu3  ;;  %v798_v49 = vadd.f32 %v797_v42, %v3825_v23 }
 0x18c   : > { %v750_v45 = vpop.f32.mrf.mxu1  ;;  %v847_v51 = vadd.f32 %v846_v44, %v3828_v25 }
 0x18d   : > { %v751_v46 = vadd.f32 %v750_v45, %v3822_v18  ;;  %v888_v57 = vmax.f32 %v798_v49, 0.0 }
 0x18e   : > { %v889_v59 = vmax.f32 %v847_v51, 0.0 }
 0x18f   : > { %v890_v48 = vmax.f32 %v751_v46, 0.0 }
 0x191   : > { %v3847_v50 = vpack.c.bf16 %v890_v48, %v887_v47 }
 0x192   : > { %v799_v52 = vpop.f32.mrf.mxu2 }
 0x193   : > { %v800_v53 = vadd.f32 %v799_v52, %v3825_v23  ;;  %v848_v54 = vpop.f32.mrf.mxu3  ;;  %1446 = vmatmul.bf16.gmra.mxu0 %v3847_v50  ;;  %1593 = vmatmul.bf16.gmra.mxu3 %v3847_v50 }
 0x194   : > { %v849_v55 = vadd.f32 %v848_v54, %v3828_v25  ;;  %v753_v56 = vpop.f32.mrf.mxu1 }
 0x195   : > { %v891_v58 = vmax.f32 %v800_v53, 0.0  ;;  %v754_v0 = vadd.f32 %v753_v56, %v3822_v18 }
 0x196   : > { %v892_v60 = vmax.f32 %v849_v55, 0.0 }
 0x197   : > { %v3854_v61 = vpack.c.bf16 %v891_v58, %v888_v57  ;;  %v893_v4 = vmax.f32 %v754_v0, 0.0 }
 0x198   : > { %v3856_v62 = vpack.c.bf16 %v892_v60, %v889_v59  ;;  %v3212_v59 = vld [vmem:[#allocation7 + $0x16c] sm:$0xf]  ;;  %v3018_v60 = vld [vmem:[#allocation7 + $0x174] sm:$0xf0] }
 0x199   : > { %1495 = vmatmul.bf16.gmra.mxu1 %v3854_v61 }
 0x19a   : > { %1544 = vmatmul.bf16.gmra.mxu2 %v3856_v62  ;;  %v802_v63 = vpop.f32.mrf.mxu2 }
 0x19b   : > { %v851_v1 = vpop.f32.mrf.mxu3  ;;  %v803_v6 = vadd.f32 %v802_v63, %v3825_v23  ;;  %v3024_v63 = vld [vmem:[#allocation7 + $0x170] sm:$0xf] }
 0x19c   : > { %v755_v2 = vpop.f32.mrf.mxu1  ;;  %v852_v8 = vadd.f32 %v851_v1, %v3828_v25 }
 0x19d   : > { %v756_v3 = vadd.f32 %v755_v2, %v3822_v18  ;;  %v894_v14 = vmax.f32 %v803_v6, 0.0  ;;  %v3021_v2 = vor.u32 %v3212_v59, %v3018_v60 }
 0x19e   : > { %v895_v16 = vmax.f32 %v852_v8, 0.0 }
 0x19f   : > { %v896_v5 = vmax.f32 %v756_v3, 0.0  ;;  %v3214_v3 = vld [vmem:[#allocation7 + $0x178] sm:$0xf0]  ;;  %1629 = vmatpush.bf16.msra.mxu0 %v3021_v2 }
 0x1a0   : > { %v3025_v6 = vor.u32 %v3214_v3, %v3024_v63  ;;  %v2988_v63 = vld [vmem:[#allocation7 + $0x128] sm:$0xf]  ;;  %v3230_v2 = vld [vmem:[#allocation7 + $0x1fc] sm:$0xf] }
 0x1a1   : > { %v3863_v7 = vpack.c.bf16 %v896_v5, %v893_v4  ;;  %v3090_v3 = vld [vmem:[#allocation7 + $0x204] sm:$0xf0] }
 0x1a2   : > { %v804_v9 = vpop.f32.mrf.mxu2  ;;  %1776 = vmatpush.bf16.msra.mxu3 %v3025_v6 }
 0x1a3   : > { %v805_v10 = vadd.f32 %v804_v9, %v3825_v23  ;;  %v853_v11 = vpop.f32.mrf.mxu3  ;;  %1451 = vmatmul.bf16.gmra.mxu0 %v3863_v7  ;;  %1598 = vmatmul.bf16.gmra.mxu3 %v3863_v7 }
 0x1a4   : > { %v854_v12 = vadd.f32 %v853_v11, %v3828_v25  ;;  %v758_v13 = vpop.f32.mrf.mxu1 }
 0x1a5   : > { %v897_v15 = vmax.f32 %v805_v10, 0.0  ;;  %v759_v22 = vadd.f32 %v758_v13, %v3822_v18  ;;  %v3006_v13 = vld [vmem:[#allocation7 + $0x15c] sm:$0xf0] }
 0x1a6   : > { %v898_v17 = vmax.f32 %v854_v12, 0.0  ;;  %v3209_v12 = vld [vmem:[#allocation7 + $0x154] sm:$0xf] }
 0x1a7   : > { %v3870_v19 = vpack.c.bf16 %v897_v15, %v894_v14  ;;  %v899_v28 = vmax.f32 %v759_v22, 0.0  ;;  %v3009_v15 = vor.u32 %v3209_v12, %v3006_v13  ;;  %v3200_v13 = vld [vmem:[#allocation7 + $0x10c] sm:$0xf] }
 0x1a8   : > { %v3872_v20 = vpack.c.bf16 %v898_v17, %v895_v16  ;;  %v3012_v16 = vld [vmem:[#allocation7 + $0x158] sm:$0xf]  ;;  %v3211_v17 = vld [vmem:[#allocation7 + $0x160] sm:$0xf0] }
 0x1a9   : > { %1500 = vmatmul.bf16.gmra.mxu1 %v3870_v19  ;;  %v3013_v22 = vor.u32 %v3211_v17, %v3012_v16  ;;  %1630 = vmatpush.bf16.msra.mxu0 %v3009_v15  ;;  %v2970_v15 = vld [vmem:[#allocation7 + $0x114] sm:$0xf0]  ;;  %v2976_v16 = vld [vmem:[#allocation7 + $0x110] sm:$0xf] }
 0x1aa   : > { %1549 = vmatmul.bf16.gmra.mxu2 %v3872_v20  ;;  %v807_v21 = vpop.f32.mrf.mxu2 }
 0x1ab   : > { %v856_v24 = vpop.f32.mrf.mxu3  ;;  %v808_v31 = vadd.f32 %v807_v21, %v3825_v23  ;;  %1777 = vmatpush.bf16.msra.mxu3 %v3013_v22 }
 0x1ac   : > { %v760_v26 = vpop.f32.mrf.mxu1  ;;  %v857_v33 = vadd.f32 %v856_v24, %v3828_v25  ;;  %v3236_v24 = vld [vmem:[#allocation7 + $0x22c] sm:$0xf] }
 0x1ad   : > { %v761_v27 = vadd.f32 %v760_v26, %v3822_v18  ;;  %v900_v39 = vmax.f32 %v808_v31, 0.0  ;;  %v3114_v26 = vld [vmem:[#allocation7 + $0x234] sm:$0xf0] }
 0x1ae   : > { %v901_v43 = vmax.f32 %v857_v33, 0.0 }
 0x1af   : > { %v902_v30 = vmax.f32 %v761_v27, 0.0  ;;  %v2928_v27 = vld [vmem:[#allocation7 + $0xb0] sm:$0xf] }
 0x1b1   : > { %v3879_v32 = vpack.c.bf16 %v902_v30, %v899_v28  ;;  %v3117_v28 = vor.u32 %v3236_v24, %v3114_v26  ;;  %v3190_v30 = vld [vmem:[#allocation7 + $0xb8] sm:$0xf0]  ;;  %v2973_v24 = vor.u32 %v3200_v13, %v2970_v15 }
 0x1b2   : > { %v809_v34 = vpop.f32.mrf.mxu2  ;;  %v2929_v33 = vor.u32 %v3190_v30, %v2928_v27  ;;  %v3202_v26 = vld [vmem:[#allocation7 + $0x118] sm:$0xf0] }
 0x1b3   : > { %v810_v35 = vadd.f32 %v809_v34, %v3825_v23  ;;  %v858_v36 = vpop.f32.mrf.mxu3  ;;  %1456 = vmatmul.bf16.gmra.mxu0 %v3879_v32  ;;  %1603 = vmatmul.bf16.gmra.mxu3 %v3879_v32  ;;  %v3206_v34 = vld [vmem:[#allocation7 + $0x13c] sm:$0xf]  ;;  %v2977_v30 = vor.u32 %v3202_v26, %v2976_v16  ;;  %v2868_v16 = vld [vmem:[#allocation7 + $0x38] sm:$0xf]  ;;  %v3191_v26 = vld [vmem:[#allocation7 + $0xc4] sm:$0xf] }
 0x1b4   : > { %v859_v37 = vadd.f32 %v858_v36, %v3828_v25  ;;  %v763_v38 = vpop.f32.mrf.mxu1  ;;  %v3000_v36 = vld [vmem:[#allocation7 + $0x140] sm:$0xf]  ;;  %1678 = vmatpush.bf16.msra.mxu1 %v3117_v28  ;;  %1727 = vmatpush.bf16.msra.mxu2 %v2929_v33  ;;  %v3078_v33 = vld [vmem:[#allocation7 + $0x1ec] sm:$0xf0] }
 0x1b5   : > { %v903_v42 = vmax.f32 %v810_v35, 0.0  ;;  %v764_v48 = vadd.f32 %v763_v38, %v3822_v18  ;;  %v2994_v35 = vld [vmem:[#allocation7 + $0x144] sm:$0xf0] }
 0x1b6   : > { %v904_v44 = vmax.f32 %v859_v37, 0.0 }
 0x1b7   : > { %v3886_v45 = vpack.c.bf16 %v903_v42, %v900_v39  ;;  %v905_v53 = vmax.f32 %v764_v48, 0.0  ;;  %v2997_v39 = vor.u32 %v3206_v34, %v2994_v35  ;;  %v3208_v42 = vld [vmem:[#allocation7 + $0x148] sm:$0xf0]  ;;  %v3102_v48 = vld [vmem:[#allocation7 + $0x21c] sm:$0xf0] }
 0x1b8   : > { %v3888_v46 = vpack.c.bf16 %v904_v44, %v901_v43  ;;  %v3001_v44 = vor.u32 %v3208_v42, %v3000_v36  ;;  %v2892_v34 = vld [vmem:[#allocation7 + $0x68] sm:$0xf] }
 0x1b9   : > { %1505 = vmatmul.bf16.gmra.mxu1 %v3886_v45  ;;  %1631 = vmatpush.bf16.msra.mxu0 %v2997_v39 }
 0x1ba   : > { %1554 = vmatmul.bf16.gmra.mxu2 %v3888_v46  ;;  %v812_v47 = vpop.f32.mrf.mxu2  ;;  %1778 = vmatpush.bf16.msra.mxu3 %v3001_v44  ;;  %v3197_v44 = vld [vmem:[#allocation7 + $0xf4] sm:$0xf] }
 0x1bb   : > { %v861_v49 = vpop.f32.mrf.mxu3  ;;  %v813_v55 = vadd.f32 %v812_v47, %v3825_v23  ;;  %v3233_v47 = vld [vmem:[#allocation7 + $0x214] sm:$0xf] }
 0x1bc   : > { %v765_v51 = vpop.f32.mrf.mxu1  ;;  %v862_v57 = vadd.f32 %v861_v49, %v3828_v25  ;;  %v2916_v49 = vld [vmem:[#allocation7 + $0x98] sm:$0xf] }
 0x1bd   : > { %v766_v52 = vadd.f32 %v765_v51, %v3822_v18  ;;  %v906_v8 = vmax.f32 %v813_v55, 0.0  ;;  %v3203_v55 = vld [vmem:[#allocation7 + $0x124] sm:$0xf] }
 0x1be   : > { %v907_v10 = vmax.f32 %v862_v57, 0.0  ;;  %v2982_v57 = vld [vmem:[#allocation7 + $0x12c] sm:$0xf0] }
 0x1bf   : > { %v908_v54 = vmax.f32 %v766_v52, 0.0  ;;  %v3105_v52 = vor.u32 %v3233_v47, %v3102_v48  ;;  %v2985_v60 = vor.u32 %v3203_v55, %v2982_v57  ;;  %v2958_v47 = vld [vmem:[#allocation7 + $0xfc] sm:$0xf0]  ;;  %v3224_v55 = vld [vmem:[#allocation7 + $0x1cc] sm:$0xf] }
 0x1c0   : > { %v3066_v57 = vld [vmem:[#allocation7 + $0x1d4] sm:$0xf0] }
 0x1c1   : > { %v3895_v56 = vpack.c.bf16 %v908_v54, %v905_v53  ;;  %v3187_v53 = vld [vmem:[#allocation7 + $0xa0] sm:$0xf0]  ;;  %1679 = vmatpush.bf16.msra.mxu1 %v3105_v52  ;;  %1632 = vmatpush.bf16.msra.mxu0 %v2985_v60  ;;  %v3178_v60 = vld [vmem:[#allocation7 + $0x58] sm:$0xf0] }
 0x1c2   : > { %v814_v58 = vpop.f32.mrf.mxu2  ;;  %v2917_v54 = vor.u32 %v3187_v53, %v2916_v49  ;;  %v2961_v49 = vor.u32 %v3197_v44, %v2958_v47  ;;  %v3199_v52 = vld [vmem:[#allocation7 + $0x100] sm:$0xf0]  ;;  %v3172_v44 = vld [vmem:[#allocation7 + $0x28] sm:$0xf0] }
 0x1c3   : > { %v815_v0 = vadd.f32 %v814_v58, %v3825_v23  ;;  %v863_v1 = vpop.f32.mrf.mxu3  ;;  %1461 = vmatmul.bf16.gmra.mxu0 %v3895_v56  ;;  %1608 = vmatmul.bf16.gmra.mxu3 %v3895_v56 }
 0x1c4   : > { %v864_v4 = vadd.f32 %v863_v1, %v3828_v25  ;;  %v768_v5 = vpop.f32.mrf.mxu1  ;;  %1728 = vmatpush.bf16.msra.mxu2 %v2917_v54 }
 0x1c5   : > { %v909_v9 = vmax.f32 %v815_v0, 0.0  ;;  %v769_v37 = vadd.f32 %v768_v5, %v3822_v18  ;;  %v3205_v0 = vld [vmem:[#allocation7 + $0x130] sm:$0xf0]  ;;  %1633 = vmatpush.bf16.msra.mxu0 %v2973_v24 }
 0x1c6   : > { %v910_v11 = vmax.f32 %v864_v4, 0.0  ;;  %v2989_v1 = vor.u32 %v3205_v0, %v2988_v63  ;;  %v2904_v4 = vld [vmem:[#allocation7 + $0x80] sm:$0xf] }
 0x1c7   : > { %v3902_v14 = vpack.c.bf16 %v909_v9, %v906_v8  ;;  %v911_v58 = vmax.f32 %v769_v37, 0.0  ;;  %v3093_v8 = vor.u32 %v3230_v2, %v3090_v3  ;;  %v3184_v9 = vld [vmem:[#allocation7 + $0x88] sm:$0xf0]  ;;  %v2946_v2 = vld [vmem:[#allocation7 + $0xe4] sm:$0xf0] }
 0x1c8   : > { %v3904_v21 = vpack.c.bf16 %v910_v11, %v907_v10  ;;  %1779 = vmatpush.bf16.msra.mxu3 %v2989_v1  ;;  %v2905_v12 = vor.u32 %v3184_v9, %v2904_v4  ;;  %v3194_v1 = vld [vmem:[#allocation7 + $0xdc] sm:$0xf]  ;;  %v2952_v3 = vld [vmem:[#allocation7 + $0xe0] sm:$0xf]  ;;  %v3196_v9 = vld [vmem:[#allocation7 + $0xe8] sm:$0xf0] }
 0x1c9   : > { %1510 = vmatmul.bf16.gmra.mxu1 %v3902_v14  ;;  %1634 = vmatpush.bf16.msra.mxu0 %v2961_v49  ;;  %v2953_v13 = vor.u32 %v3196_v9, %v2952_v3 }
 0x1ca   : > { %1559 = vmatmul.bf16.gmra.mxu2 %v3904_v21  ;;  %v817_v31 = vpop.f32.mrf.mxu2  ;;  %1680 = vmatpush.bf16.msra.mxu1 %v3093_v8  ;;  %v2949_v8 = vor.u32 %v3194_v1, %v2946_v2  ;;  %v3169_v2 = vld [vmem:[#allocation7 + $0x10] sm:$0xf0] }
 0x1cb   : > { %v866_v38 = vpop.f32.mrf.mxu3  ;;  %v818_v5 = vadd.f32 %v817_v31, %v3825_v23  ;;  %1729 = vmatpush.bf16.msra.mxu2 %v2905_v12  ;;  %v3227_v31 = vld [vmem:[#allocation7 + $0x1e4] sm:$0xf] }
 0x1cc   : > { %v770_v43 = vpop.f32.mrf.mxu1  ;;  %v867_v10 = vadd.f32 %v866_v38, %v3828_v25  ;;  %v3081_v37 = vor.u32 %v3227_v31, %v3078_v33  ;;  %v3181_v38 = vld [vmem:[#allocation7 + $0x70] sm:$0xf0]  ;;  %1780 = vmatpush.bf16.msra.mxu3 %v2977_v30  ;;  %v2940_v33 = vld [vmem:[#allocation7 + $0xc8] sm:$0xf] }
 0x1cd   : > { %v771_v51 = vadd.f32 %v770_v43, %v3822_v18  ;;  %v912_v35 = vmax.f32 %v818_v5, 0.0  ;;  %v2893_v43 = vor.u32 %v3181_v38, %v2892_v34  ;;  %1635 = vmatpush.bf16.msra.mxu0 %v2949_v8  ;;  %v3193_v34 = vld [vmem:[#allocation7 + $0xd0] sm:$0xf0]  ;;  %v2856_v38 = vld [vmem:[#allocation7 + $0x20] sm:$0xf] }
 0x1ce   : > { %v913_v39 = vmax.f32 %v867_v10, 0.0  ;;  %1681 = vmatpush.bf16.msra.mxu1 %v3081_v37  ;;  %v3221_v10 = vld [vmem:[#allocation7 + $0x1b4] sm:$0xf]  ;;  %v3042_v37 = vld [vmem:[#allocation7 + $0x1a4] sm:$0xf0] }
 0x1cf   : > { %v914_v59 = vmax.f32 %v771_v51, 0.0  ;;  %v2964_v51 = vld [vmem:[#allocation7 + $0xf8] sm:$0xf]  ;;  %1730 = vmatpush.bf16.msra.mxu2 %v2893_v43 }
 0x1d0   : > { %v2965_v54 = vor.u32 %v3199_v52, %v2964_v51  ;;  %v2857_v51 = vor.u32 %v3172_v44, %v2856_v38 }
 0x1d1   : > { %v3911_v6 = vpack.c.bf16 %v914_v59, %v911_v58  ;;  %v2880_v58 = vld [vmem:[#allocation7 + $0x50] sm:$0xf]  ;;  %v3069_v59 = vor.u32 %v3224_v55, %v3066_v57 }
 0x1d2   : > { %v819_v11 = vpop.f32.mrf.mxu2  ;;  %1781 = vmatpush.bf16.msra.mxu3 %v2965_v54  ;;  %v2881_v0 = vor.u32 %v3178_v60, %v2880_v58  ;;  %v3215_v58 = vld [vmem:[#allocation7 + $0x184] sm:$0xf]  ;;  %v2844_v60 = vld [vmem:[#allocation7 + $0x8] sm:$0xf] }
 0x1d3   : > { %v820_v17 = vadd.f32 %v819_v11, %v3825_v23  ;;  %v868_v22 = vpop.f32.mrf.mxu3  ;;  %1466 = vmatmul.bf16.gmra.mxu0 %v3911_v6  ;;  %1613 = vmatmul.bf16.gmra.mxu3 %v3911_v6  ;;  %v3054_v11 = vld [vmem:[#allocation7 + $0x1bc] sm:$0xf0] }
 0x1d4   : > { %v869_v27 = vadd.f32 %v868_v22, %v3828_v25  ;;  %v773_v28 = vpop.f32.mrf.mxu1  ;;  %1682 = vmatpush.bf16.msra.mxu1 %v3069_v59  ;;  %1731 = vmatpush.bf16.msra.mxu2 %v2881_v0  ;;  %v3057_v15 = vor.u32 %v3221_v10, %v3054_v11  ;;  %v3030_v59 = vld [vmem:[#allocation7 + $0x18c] sm:$0xf0] }
 0x1d5   : > { %v915_v36 = vmax.f32 %v820_v17, 0.0  ;;  %v774_v4 = vadd.f32 %v773_v28, %v3822_v18  ;;  %v3175_v17 = vld [vmem:[#allocation7 + $0x40] sm:$0xf0]  ;;  %v3033_v1 = vor.u32 %v3215_v58, %v3030_v59 }
 0x1d6   : > { %v916_v42 = vmax.f32 %v869_v27, 0.0  ;;  %v2869_v24 = vor.u32 %v3175_v17, %v2868_v16  ;;  %1782 = vmatpush.bf16.msra.mxu3 %v2953_v13  ;;  %v2934_v27 = vld [vmem:[#allocation7 + $0xcc] sm:$0xf0] }
 0x1d7   : > { %v3918_v48 = vpack.c.bf16 %v915_v36, %v912_v35  ;;  %v917_v28 = vmax.f32 %v774_v4, 0.0  ;;  %v2937_v31 = vor.u32 %v3191_v26, %v2934_v27  ;;  %v2941_v35 = vor.u32 %v3193_v34, %v2940_v33  ;;  %v3218_v36 = vld [vmem:[#allocation7 + $0x19c] sm:$0xf] }
 0x1d8   : > { %v3920_v53 = vpack.c.bf16 %v916_v42, %v913_v39  ;;  %1683 = vmatpush.bf16.msra.mxu1 %v3057_v15  ;;  %1732 = vmatpush.bf16.msra.mxu2 %v2869_v24  ;;  %v3045_v43 = vor.u32 %v3218_v36, %v3042_v37 }
 0x1d9   : > { %1515 = vmatmul.bf16.gmra.mxu1 %v3918_v48  ;;  %1636 = vmatpush.bf16.msra.mxu0 %v2937_v31 }
 0x1da   : > { %1564 = vmatmul.bf16.gmra.mxu2 %v3920_v53  ;;  %v822_v63 = vpop.f32.mrf.mxu2  ;;  %1783 = vmatpush.bf16.msra.mxu3 %v2941_v35 }
 0x1db   : > { %v871_v5 = vpop.f32.mrf.mxu3  ;;  %v823_v39 = vadd.f32 %v822_v63, %v3825_v23 }
 0x1dc   : > { %v775_v12 = vpop.f32.mrf.mxu1  ;;  %v872_v47 = vadd.f32 %v871_v5, %v3828_v25  ;;  %1684 = vmatpush.bf16.msra.mxu1 %v3045_v43  ;;  %1733 = vmatpush.bf16.msra.mxu2 %v2857_v51  ;;  %v2845_v5 = vor.u32 %v3169_v2, %v2844_v60 }
 0x1dd   : > { %v776_v22 = vadd.f32 %v775_v12, %v3822_v18  ;;  %v918_v63 = vmax.f32 %v823_v39, 0.0 }
 0x1de   : > { %v919_v3 = vmax.f32 %v872_v47, 0.0 }
 0x1df   : > { %v920_v30 = vmax.f32 %v776_v22, 0.0 }
 0x1e0   : > { %1685 = vmatpush.bf16.msra.mxu1 %v3033_v1  ;;  %1734 = vmatpush.bf16.msra.mxu2 %v2845_v5 }
 0x1e1   : > { %v3927_v42 = vpack.c.bf16 %v920_v30, %v917_v28 }
 0x1e2   : > { %v824_v49 = vpop.f32.mrf.mxu2 }
 0x1e3   : > { %v825_v52 = vadd.f32 %v824_v49, %v3825_v23  ;;  %v873_v54 = vpop.f32.mrf.mxu3  ;;  %1471 = vmatmul.bf16.gmra.mxu0 %v3927_v42  ;;  %1618 = vmatmul.bf16.gmra.mxu3 %v3927_v42 }
 0x1e4   : > { %v874_v55 = vadd.f32 %v873_v54, %v3828_v25  ;;  %v778_v57 = vpop.f32.mrf.mxu1 }
 0x1e5   : > { %v921_v0 = vmax.f32 %v825_v52, 0.0  ;;  %v779_v11 = vadd.f32 %v778_v57, %v3822_v18 }
 0x1e6   : > { %v922_v4 = vmax.f32 %v874_v55, 0.0 }
 0x1e7   : > { %v3934_v8 = vpack.c.bf16 %v921_v0, %v918_v63  ;;  %v923_v16 = vmax.f32 %v779_v11, 0.0 }
 0x1e8   : > { %v3936_v9 = vpack.c.bf16 %v922_v4, %v919_v3 }
 0x1e9   : > { %1520 = vmatmul.bf16.gmra.mxu1 %v3934_v8 }
 0x1ea   : > { %1569 = vmatmul.bf16.gmra.mxu2 %v3936_v9  ;;  %v827_v10 = vpop.f32.mrf.mxu2 }
 0x1eb   : > { %v876_v12 = vpop.f32.mrf.mxu3  ;;  %v828_v22 = vadd.f32 %v827_v10, %v3825_v23 }
 0x1ec   : > { %v780_v13 = vpop.f32.mrf.mxu1  ;;  %v877_v26 = vadd.f32 %v876_v12, %v3828_v25 }
 0x1ed   : > { %v781_v15 = vadd.f32 %v780_v13, %v3822_v18  ;;  %v924_v33 = vmax.f32 %v828_v22, 0.0 }
 0x1ee   : > { %v925_v34 = vmax.f32 %v877_v26, 0.0 }
 0x1ef   : > { %v926_v17 = vmax.f32 %v781_v15, 0.0 }
 0x1f1   : > { %v3943_v24 = vpack.c.bf16 %v926_v17, %v923_v16 }
 0x1f2   : > { %v829_v27 = vpop.f32.mrf.mxu2 }
 0x1f3   : > { %v830_v28 = vadd.f32 %v829_v27, %v3825_v23  ;;  %v878_v30 = vpop.f32.mrf.mxu3  ;;  %1476 = vmatmul.bf16.gmra.mxu0 %v3943_v24  ;;  %1623 = vmatmul.bf16.gmra.mxu3 %v3943_v24 }
 0x1f4   : > { %v879_v31 = vadd.f32 %v878_v30, %v3828_v25 }
 0x1f5   : > { %v927_v18 = vmax.f32 %v830_v28, 0.0 }
 0x1f6   : > { %v928_v35 = vmax.f32 %v879_v31, 0.0 }
 0x1f7   : > { %v3950_v36 = vpack.c.bf16 %v927_v18, %v924_v33 }
 0x1f8   : > { %v3952_v37 = vpack.c.bf16 %v928_v35, %v925_v34 }
 0x1f9   : > { %1525 = vmatmul.bf16.gmra.mxu1 %v3950_v36 }
 0x1fa   : > { %1574 = vmatmul.bf16.gmra.mxu2 %v3952_v37 }
 0x200   : > { %v1442_v23 = vpop.f32.mrf.mxu0 }
 0x203   : > { %1637 = vmatmul.bf16.vlgmr.msra.gmra.mxu0 %v3838_v40  ;;  %1784 = vmatmul.bf16.vlgmr.msra.gmra.mxu3 %v3838_v40 }
 0x206   : > { %v1491_v38 = vpop.f32.mrf.mxu1  ;;  %v3958_v39 = vpop.f32.mrf.mxu3 }
 0x207   : > { %v1492_v25 = vadd.f32 %v1491_v38, %v1442_v23 }
 0x208   : > { %v1444_v43 = vpop.f32.mrf.mxu0 }
 0x209   : > { %1686 = vmatmul.bf16.vlgmr.msra.gmra.mxu1 %v3840_v41 }
 0x20a   : > { %1735 = vmatmul.bf16.vlgmr.msra.gmra.mxu2 %v3831_v29 }
 0x20d   : > { %v1540_v44 = vpop.f32.mrf.mxu2 }
 0x20e   : > { %v3962_v47 = vadd.f32 %v1540_v44, %v1492_v25  ;;  %v1493_v49 = vpop.f32.mrf.mxu1  ;;  %v3964_v51 = vpop.f32.mrf.mxu3  ;;  %v3238_v44 = vld [vmem:[#allocation7 + $0x238] sm:$0xf0] }
 0x20f   : > { %v1494_v52 = vadd.f32 %v1493_v49, %v1444_v43  ;;  %v3120_v43 = vld [vmem:[#allocation7 + $0x230] sm:$0xf] }
 0x210   : > { %v1447_v54 = vpop.f32.mrf.mxu0  ;;  %v3121_v49 = vor.u32 %v3238_v44, %v3120_v43  ;;  %v3060_v43 = vld [vmem:[#allocation7 + $0x1b8] sm:$0xf]  ;;  %v3223_v44 = vld [vmem:[#allocation7 + $0x1c0] sm:$0xf0] }
 0x212   : > { %1825 = vmatpush.bf16.msrb.mxu0 %v3121_v49  ;;  %v3061_v49 = vor.u32 %v3223_v44, %v3060_v43 }
 0x213   : > { %1642 = vmatmul.bf16.gmra.mxu0 %v3854_v61  ;;  %1789 = vmatmul.bf16.gmra.mxu3 %v3854_v61 }
 0x215   : > { %v1542_v40 = vpop.f32.mrf.mxu2 }
 0x216   : > { %v3968_v55 = vadd.f32 %v1542_v40, %v1494_v52  ;;  %v1496_v57 = vpop.f32.mrf.mxu1  ;;  %v3970_v58 = vpop.f32.mrf.mxu3 }
 0x217   : > { %v1497_v59 = vadd.f32 %v1496_v57, %v1447_v54  ;;  %v3108_v57 = vld [vmem:[#allocation7 + $0x218] sm:$0xf] }
 0x218   : > { %v1449_v60 = vpop.f32.mrf.mxu0 }
 0x219   : > { %1691 = vmatmul.bf16.gmra.mxu1 %v3856_v62 }
 0x21a   : > { %1740 = vmatmul.bf16.gmra.mxu2 %v3847_v50 }
 0x21d   : > { %v1545_v63 = vpop.f32.mrf.mxu2 }
 0x21e   : > { %v3976_v0 = vadd.f32 %v1545_v63, %v1497_v59  ;;  %v1498_v1 = vpop.f32.mrf.mxu1  ;;  %v3978_v61 = vpop.f32.mrf.mxu3  ;;  %v3235_v59 = vld [vmem:[#allocation7 + $0x220] sm:$0xf0] }
 0x21f   : > { %v1499_v2 = vadd.f32 %v1498_v1, %v1449_v60  ;;  %v3109_v63 = vor.u32 %v3235_v59, %v3108_v57  ;;  %v3220_v57 = vld [vmem:[#allocation7 + $0x1a8] sm:$0xf0] }
 0x220   : > { %v1452_v3 = vpop.f32.mrf.mxu0 }
 0x221   : > { %1826 = vmatpush.bf16.msrb.mxu0 %v3109_v63 }
 0x223   : > { %1647 = vmatmul.bf16.gmra.mxu0 %v3870_v19  ;;  %1794 = vmatmul.bf16.gmra.mxu3 %v3870_v19 }
 0x225   : > { %v1547_v4 = vpop.f32.mrf.mxu2 }
 0x226   : > { %v3982_v5 = vadd.f32 %v1547_v4, %v1499_v2  ;;  %v1501_v10 = vpop.f32.mrf.mxu1  ;;  %v3984_v11 = vpop.f32.mrf.mxu3 }
 0x227   : > { %v1502_v12 = vadd.f32 %v1501_v10, %v1452_v3  ;;  %v3232_v3 = vld [vmem:[#allocation7 + $0x208] sm:$0xf0] }
 0x228   : > { %v1454_v13 = vpop.f32.mrf.mxu0 }
 0x229   : > { %1696 = vmatmul.bf16.gmra.mxu1 %v3872_v20 }
 0x22a   : > { %1745 = vmatmul.bf16.gmra.mxu2 %v3863_v7 }
 0x22d   : > { %v1550_v15 = vpop.f32.mrf.mxu2 }
 0x22e   : > { %v3990_v16 = vadd.f32 %v1550_v15, %v1502_v12  ;;  %v1503_v17 = vpop.f32.mrf.mxu1  ;;  %v3992_v19 = vpop.f32.mrf.mxu3 }
 0x22f   : > { %v1504_v22 = vadd.f32 %v1503_v17, %v1454_v13  ;;  %v3084_v17 = vld [vmem:[#allocation7 + $0x1e8] sm:$0xf] }
 0x230   : > { %v1457_v26 = vpop.f32.mrf.mxu0 }
 0x233   : > { %1652 = vmatmul.bf16.gmra.mxu0 %v3886_v45  ;;  %1799 = vmatmul.bf16.gmra.mxu3 %v3886_v45 }
 0x235   : > { %v1552_v27 = vpop.f32.mrf.mxu2 }
 0x236   : > { %v3996_v28 = vadd.f32 %v1552_v27, %v1504_v22  ;;  %v1506_v30 = vpop.f32.mrf.mxu1  ;;  %v3998_v31 = vpop.f32.mrf.mxu3  ;;  %v3229_v22 = vld [vmem:[#allocation7 + $0x1f0] sm:$0xf0] }
 0x237   : > { %v1507_v33 = vadd.f32 %v1506_v30, %v1457_v26  ;;  %v3085_v26 = vor.u32 %v3229_v22, %v3084_v17  ;;  %v3072_v30 = vld [vmem:[#allocation7 + $0x1d0] sm:$0xf] }
 0x238   : > { %v1459_v18 = vpop.f32.mrf.mxu0 }
 0x239   : > { %1701 = vmatmul.bf16.gmra.mxu1 %v3888_v46 }
 0x23a   : > { %1750 = vmatmul.bf16.gmra.mxu2 %v3879_v32 }
 0x23d   : > { %v1555_v34 = vpop.f32.mrf.mxu2 }
 0x23e   : > { %v4004_v35 = vadd.f32 %v1555_v34, %v1507_v33  ;;  %v1508_v23 = vpop.f32.mrf.mxu1  ;;  %v4006_v45 = vpop.f32.mrf.mxu3  ;;  %v3226_v33 = vld [vmem:[#allocation7 + $0x1d8] sm:$0xf0] }
 0x23f   : > { %v1509_v38 = vadd.f32 %v1508_v23, %v1459_v18 }
 0x240   : > { %v1462_v25 = vpop.f32.mrf.mxu0 }
 0x243   : > { %1657 = vmatmul.bf16.gmra.mxu0 %v3902_v14  ;;  %1804 = vmatmul.bf16.gmra.mxu3 %v3902_v14  ;;  %v3096_v14 = vld [vmem:[#allocation7 + $0x200] sm:$0xf] }
 0x244   : > { %v3097_v4 = vor.u32 %v3232_v3, %v3096_v14  ;;  %v3036_v14 = vld [vmem:[#allocation7 + $0x188] sm:$0xf]  ;;  %v3217_v3 = vld [vmem:[#allocation7 + $0x190] sm:$0xf0] }
 0x245   : > { %v1557_v52 = vpop.f32.mrf.mxu2 }
 0x246   : > { %v4010_v54 = vadd.f32 %v1557_v52, %v1509_v38  ;;  %v1511_v32 = vpop.f32.mrf.mxu1  ;;  %v4012_v40 = vpop.f32.mrf.mxu3  ;;  %1827 = vmatpush.bf16.msrb.mxu0 %v3097_v4  ;;  %v3037_v4 = vor.u32 %v3217_v3, %v3036_v14 }
 0x247   : > { %v1512_v60 = vadd.f32 %v1511_v32, %v1462_v25 }
 0x248   : > { %v1464_v2 = vpop.f32.mrf.mxu0 }
 0x249   : > { %1706 = vmatmul.bf16.gmra.mxu1 %v3904_v21 }
 0x24a   : > { %1755 = vmatmul.bf16.gmra.mxu2 %v3895_v56  ;;  %1828 = vmatpush.bf16.msrb.mxu0 %v3085_v26  ;;  %v3073_v56 = vor.u32 %v3226_v33, %v3072_v30 }
 0x24d   : > { %v1560_v10 = vpop.f32.mrf.mxu2 }
 0x24e   : > { %v4018_v12 = vadd.f32 %v1560_v10, %v1512_v60  ;;  %v1513_v13 = vpop.f32.mrf.mxu1  ;;  %v4020_v15 = vpop.f32.mrf.mxu3  ;;  %1829 = vmatpush.bf16.msrb.mxu0 %v3073_v56 }
 0x24f   : > { %v1514_v18 = vadd.f32 %v1513_v13, %v1464_v2 }
 0x250   : > { %v4022_v27 = vpop.f32.mrf.mxu0 }
 0x252   : > { %1830 = vmatpush.bf16.msrb.mxu0 %v3061_v49 }
 0x253   : > { %1662 = vmatmul.bf16.gmra.mxu0 %v3918_v48  ;;  %1809 = vmatmul.bf16.gmra.mxu3 %v3918_v48  ;;  %v3048_v48 = vld [vmem:[#allocation7 + $0x1a0] sm:$0xf] }
 0x254   : > { %v3049_v59 = vor.u32 %v3220_v57, %v3048_v48 }
 0x255   : > { %v1562_v34 = vpop.f32.mrf.mxu2 }
 0x256   : > { %v4026_v23 = vadd.f32 %v1562_v34, %v1514_v18  ;;  %v4028_v38 = vpop.f32.mrf.mxu1  ;;  %v4030_v25 = vpop.f32.mrf.mxu3  ;;  %1831 = vmatpush.bf16.msrb.mxu0 %v3049_v59 }
 0x257   : > { %4583 = vst [vmem:[#allocation17_spill] sm:$0xff] %v4030_v25 }
 0x258   : > { %v1469_v32 = vpop.f32.mrf.mxu0 }
 0x259   : > { %1711 = vmatmul.bf16.gmra.mxu1 %v3920_v53 }
 0x25a   : > { %1760 = vmatmul.bf16.gmra.mxu2 %v3911_v6  ;;  %1832 = vmatpush.bf16.msrb.mxu0 %v3037_v4 }
 0x25d   : > { %v1565_v60 = vpop.f32.mrf.mxu2 }
 0x25e   : > { %v1518_v63 = vpop.f32.mrf.mxu1  ;;  %v4036_v2 = vpop.f32.mrf.mxu3 }
 0x25f   : > { %4584 = vst [vmem:[#allocation18_spill] sm:$0xff] %v4036_v2 }
 0x260   : > { %v1472_v10 = vpop.f32.mrf.mxu0 }
 0x263   : > { %1667 = vmatmul.bf16.gmra.mxu0 %v3934_v8  ;;  %1814 = vmatmul.bf16.gmra.mxu3 %v3934_v8 }
 0x265   : > { %v1567_v13 = vpop.f32.mrf.mxu2 }
 0x266   : > { %v1521_v17 = vpop.f32.mrf.mxu1  ;;  %v4040_v6 = vpop.f32.mrf.mxu3 }
 0x267   : > { %4585 = vst [vmem:[#allocation19_spill] sm:$0xff] %v4040_v6  ;;  %v1519_v6 = vadd.f32 %v1518_v63, %v1469_v32 }
 0x268   : > { %v1474_v22 = vpop.f32.mrf.mxu0 }
 0x269   : > { %1716 = vmatmul.bf16.gmra.mxu1 %v3936_v9 }
 0x26a   : > { %1765 = vmatmul.bf16.gmra.mxu2 %v3927_v42 }
 0x26d   : > { %v1570_v26 = vpop.f32.mrf.mxu2 }
 0x26e   : > { %v1523_v30 = vpop.f32.mrf.mxu1  ;;  %v4044_v33 = vpop.f32.mrf.mxu3 }
 0x26f   : > { %4586 = vst [vmem:[#allocation20_spill] sm:$0xff] %v4044_v33  ;;  %v1524_v3 = vadd.f32 %v1523_v30, %v1474_v22 }
 0x270   : > { %v1477_v56 = vpop.f32.mrf.mxu0 }
 0x273   : > { %1672 = vmatmul.bf16.gmra.mxu0 %v3950_v36  ;;  %1819 = vmatmul.bf16.gmra.mxu3 %v3950_v36 }
 0x275   : > { %v1572_v18 = vpop.f32.mrf.mxu2 }
 0x276   : > { %v1526_v8 = vpop.f32.mrf.mxu1  ;;  %v4048_v34 = vpop.f32.mrf.mxu3  ;;  %v1573_v52 = vadd.f32 %v1572_v18, %v1524_v3 }
 0x277   : > { %v1527_v57 = vadd.f32 %v1526_v8, %v1477_v56  ;;  %v1568_v56 = vadd.f32 %v1567_v13, %v1519_v6  ;;  %v4588_v13 = vpack.c.bf16 %v4010_v54, %v4004_v35 }
 0x278   : > { %v1479_v43 = vpop.f32.mrf.mxu0 }
 0x279   : > { %1721 = vmatmul.bf16.gmra.mxu1 %v3952_v37 }
 0x27a   : > { %1770 = vmatmul.bf16.gmra.mxu2 %v3943_v24  ;;  %v1522_v24 = vadd.f32 %v1521_v17, %v1472_v10 }
 0x27c   : > { %v1571_v33 = vadd.f32 %v1570_v26, %v1522_v24 }
 0x27d   : > { %v1575_v44 = vpop.f32.mrf.mxu2 }
 0x27e   : > { %v1528_v42 = vpop.f32.mrf.mxu1  ;;  %v4052_v49 = vpop.f32.mrf.mxu3  ;;  %v1576_v4 = vadd.f32 %v1575_v44, %v1527_v57  ;;  %v4106_v57 = vld [vmem:[%s3652_s16] sm:$0xff] }
 0x27f   : > { %v1529_v59 = vadd.f32 %v1528_v42, %v1479_v43 }
 0x280   : > { %v1638_v48 = vpop.f32.mrf.mxu0 }
 0x281   : > { %v1639_v36 = vadd.f32 %v1638_v48, %v3958_v39  ;;  %v1892_v39 = vpack.c.bf16 %v1573_v52, %v1571_v33 }
 0x283   : > { %1833 = vmatmul.bf16.vlgmr.msrb.gmra.mxu0 %v3840_v41  ;;  %v1517_v41 = vadd.f32 %v4028_v38, %v4022_v27 }
 0x285   : > { %v1577_v14 = vpop.f32.mrf.mxu2  ;;  %v1566_v8 = vadd.f32 %v1565_v60, %v1517_v41 }
 0x286   : > { %v1578_v29 = vadd.f32 %v1577_v14, %v1529_v59  ;;  %v1687_v50 = vpop.f32.mrf.mxu1  ;;  %v1785_v7 = vpop.f32.mrf.mxu3 }
 0x287   : > { %v4056_v1 = vadd.f32 %v1687_v50, %v1639_v36  ;;  %v1889_v32 = vpack.c.bf16 %v1568_v56, %v1566_v8  ;;  %v4125_v56 = vld [vmem:[%s3652_s16 + $0x8] sm:$0xff] }
 0x288   : > { %v1895_v25 = vpack.c.bf16 %v1578_v29, %v1576_v4  ;;  %v1640_v2 = vpop.f32.mrf.mxu0 }
 0x289   : > { %v1641_v22 = vadd.f32 %v1640_v2, %v3964_v51 }
 0x28a   : > { %1906 = vmatpush.bf16.msrb.mxu1 %v1895_v25 }
 0x28d   : > { %v1736_v30 = vpop.f32.mrf.mxu2 }
 0x28e   : > { %v4061_v43 = vadd.f32 %v1785_v7, %v1736_v30  ;;  %1907 = vmatpush.bf16.msrb.mxu1 %v1892_v39  ;;  %v1689_v50 = vpop.f32.mrf.mxu1  ;;  %v4063_v10 = vpop.f32.mrf.mxu3  ;;  %v4587_v7 = vpack.c.bf16 %v4026_v23, %v4018_v12 }
 0x28f   : > { %v4065_v29 = vadd.f32 %v1689_v50, %v1641_v22 }
 0x290   : > { %v1643_v63 = vpop.f32.mrf.mxu0 }
 0x291   : > { %v1875_v25 = vpack.c.bf16 %v4065_v29, %v4056_v1  ;;  %v1644_v51 = vadd.f32 %v1643_v63, %v3970_v58  ;;  %v4589_v58 = vpack.c.bf16 %v3996_v28, %v3990_v16  ;;  %v4591_v28 = vpack.c.bf16 %v3968_v55, %v3962_v47 }
 0x292   : > { %1908 = vmatpush.bf16.msrb.mxu1 %v1889_v32 }
 0x293   : > { %1838 = vmatmul.bf16.gmra.mxu0 %v3856_v62 }
 0x295   : > { %v4071_v27 = vpop.f32.mrf.mxu2 }
 0x296   : > { %1909 = vmatpush.bf16.msrb.mxu1 %v4587_v7  ;;  %v1692_v38 = vpop.f32.mrf.mxu1  ;;  %v1790_v52 = vpop.f32.mrf.mxu3 }
 0x297   : > { %v4076_v60 = vadd.f32 %v1692_v38, %v1644_v51 }
 0x298   : > { %v1645_v2 = vpop.f32.mrf.mxu0 }
 0x299   : > { %v1646_v17 = vadd.f32 %v1645_v2, %v3978_v61  ;;  %v4590_v61 = vpack.c.bf16 %v3982_v5, %v3976_v0 }
 0x29a   : > { %1910 = vmatpush.bf16.msrb.mxu1 %v4588_v13 }
 0x29d   : > { %v1741_v62 = vpop.f32.mrf.mxu2 }
 0x29e   : > { %v4082_v6 = vadd.f32 %v1790_v52, %v1741_v62  ;;  %1911 = vmatpush.bf16.msrb.mxu1 %v4589_v58  ;;  %v1694_v12 = vpop.f32.mrf.mxu1  ;;  %v4087_v23 = vpop.f32.mrf.mxu3  ;;  %v4142_v52 = vld [vmem:[%s3652_s16 + $0x10] sm:$0xff] }
 0x29f   : > { %v4089_v26 = vadd.f32 %v1694_v12, %v1646_v17 }
 0x2a0   : > { %v1648_v33 = vpop.f32.mrf.mxu0 }
 0x2a1   : > { %v1878_v35 = vpack.c.bf16 %v4089_v26, %v4076_v60  ;;  %v1649_v54 = vadd.f32 %v1648_v33, %v3984_v11 }
 0x2a2   : > { %1912 = vmatpush.bf16.msrb.mxu1 %v4590_v61 }
 0x2a3   : > { %1843 = vmatmul.bf16.gmra.mxu0 %v3872_v20 }
 0x2a5   : > { %v4098_v16 = vpop.f32.mrf.mxu2 }
 0x2a6   : > { %1913 = vmatpush.bf16.msrb.mxu1 %v4591_v28  ;;  %v1697_v18 = vpop.f32.mrf.mxu1  ;;  %v1795_v44 = vpop.f32.mrf.mxu3 }
 0x2a7   : > { %v4103_v42 = vadd.f32 %v1697_v18, %v1649_v54  ;;  %v4150_v54 = vld [vmem:[%s3652_s16 + $0x18] sm:$0xff] }
 0x2a8   : > { %v1650_v48 = vpop.f32.mrf.mxu0 }
 0x2a9   : > { %1914 = vmatmul.bf16.vlgmr.msrb.gmra.mxu1 %v4106_v57  ;;  %v1651_v20 = vadd.f32 %v1650_v48, %v3992_v19  ;;  %v4155_v48 = vld [vmem:[%s3652_s16 + $0x20] sm:$0xff] }
 0x2ad   : > { %v1746_v0 = vpop.f32.mrf.mxu2 }
 0x2ae   : > { %v4110_v5 = vadd.f32 %v1795_v44, %v1746_v0  ;;  %v1699_v11 = vpop.f32.mrf.mxu1  ;;  %v4114_v47 = vpop.f32.mrf.mxu3 }
 0x2af   : > { %v4112_v59 = vadd.f32 %v1699_v11, %v1651_v20 }
 0x2b0   : > { %v1653_v55 = vpop.f32.mrf.mxu0 }
 0x2b1   : > { %v1881_v36 = vpack.c.bf16 %v4112_v59, %v4103_v42  ;;  %v1654_v14 = vadd.f32 %v1653_v55, %v3998_v31  ;;  %v4160_v55 = vld [vmem:[%s3652_s16 + $0x28] sm:$0xff] }
 0x2b3   : > { %1848 = vmatmul.bf16.gmra.mxu0 %v3888_v46 }
 0x2b5   : > { %v4120_v3 = vpop.f32.mrf.mxu2 }
 0x2b6   : > { %v1702_v4 = vpop.f32.mrf.mxu1  ;;  %v1800_v41 = vpop.f32.mrf.mxu3  ;;  %v1798_v42 = vadd.f32 %v4114_v47, %v4120_v3 }
 0x2b7   : > { %v4122_v19 = vadd.f32 %v1702_v4, %v1654_v14 }
 0x2b8   : > { %v1655_v24 = vpop.f32.mrf.mxu0 }
 0x2b9   : > { %1919 = vmatmul.bf16.gmra.mxu1 %v4125_v56  ;;  %v1656_v39 = vadd.f32 %v1655_v24, %v4006_v45  ;;  %v4592_v24 = vld [vmem:[#allocation20_spill] sm:$0xff] }
 0x2bd   : > { %v1751_v22 = vpop.f32.mrf.mxu2 }
 0x2be   : > { %v4129_v30 = vadd.f32 %v1800_v41, %v1751_v22  ;;  %v1704_v46 = vpop.f32.mrf.mxu1  ;;  %v4135_v32 = vpop.f32.mrf.mxu3 }
 0x2bf   : > { %v4131_v8 = vadd.f32 %v1704_v46, %v1656_v39 }
 0x2c0   : > { %v1658_v31 = vpop.f32.mrf.mxu0 }
 0x2c1   : > { %v1884_v50 = vpack.c.bf16 %v4131_v8, %v4122_v19  ;;  %v1659_v63 = vadd.f32 %v1658_v31, %v4012_v40  ;;  %v4593_v31 = vld [vmem:[#allocation19_spill] sm:$0xff] }
 0x2c3   : > { %1853 = vmatmul.bf16.gmra.mxu0 %v3904_v21 }
 0x2c5   : > { %v4139_v51 = vpop.f32.mrf.mxu2 }
 0x2c6   : > { %v1707_v7 = vpop.f32.mrf.mxu1  ;;  %v1805_v2 = vpop.f32.mrf.mxu3  ;;  %v1803_v1 = vadd.f32 %v4135_v32, %v4139_v51 }
 0x2c7   : > { %v1708_v45 = vadd.f32 %v1707_v7, %v1659_v63 }
 0x2c8   : > { %v1660_v38 = vpop.f32.mrf.mxu0 }
 0x2c9   : > { %1924 = vmatmul.bf16.gmra.mxu1 %v4142_v52  ;;  %v1661_v13 = vadd.f32 %v1660_v38, %v4020_v15  ;;  %v4594_v38 = vld [vmem:[#allocation18_spill] sm:$0xff] }
 0x2cd   : > { %v1756_v17 = vpop.f32.mrf.mxu2 }
 0x2ce   : > { %v4146_v62 = vadd.f32 %v1805_v2, %v1756_v17  ;;  %v1709_v21 = vpop.f32.mrf.mxu1  ;;  %v1807_v47 = vpop.f32.mrf.mxu3 }
 0x2cf   : > { %v1710_v58 = vadd.f32 %v1709_v21, %v1661_v13 }
 0x2d0   : > { %v1663_v40 = vpop.f32.mrf.mxu0 }
 0x2d1   : > { %v1887_v12 = vpack.c.bf16 %v1710_v58, %v1708_v45  ;;  %v1788_v58 = vadd.f32 %v4063_v10, %v4071_v27  ;;  %v1793_v10 = vadd.f32 %v4087_v23, %v4098_v16 }
 0x2d3   : > { %1858 = vmatmul.bf16.gmra.mxu0 %v3920_v53 }
 0x2d5   : > { %v4223_v29 = vpop.f32.mrf.mxu2 }
 0x2d6   : > { %v1712_v33 = vpop.f32.mrf.mxu1 }
 0x2d8   : > { %v1665_v61 = vpop.f32.mrf.mxu0 }
 0x2d9   : > { %1929 = vmatmul.bf16.gmra.mxu1 %v4150_v54  ;;  %v1666_v2 = vadd.f32 %v1665_v61, %v4594_v38 }
 0x2de   : > { %v1714_v28 = vpop.f32.mrf.mxu1 }
 0x2df   : > { %v1715_v17 = vadd.f32 %v1714_v28, %v1666_v2 }
 0x2e0   : > { %v1668_v18 = vpop.f32.mrf.mxu0 }
 0x2e1   : > { %v1669_v63 = vadd.f32 %v1668_v18, %v4593_v31 }
 0x2e3   : > { %1863 = vmatmul.bf16.gmra.mxu0 %v3936_v9 }
 0x2e6   : > { %v1717_v15 = vpop.f32.mrf.mxu1 }
 0x2e7   : > { %v1718_v13 = vadd.f32 %v1717_v15, %v1669_v63  ;;  %v4196_v15 = vld [vmem:[%s3652_s16 + $0x38] sm:$0xff] }
 0x2e8   : > { %v1670_v44 = vpop.f32.mrf.mxu0 }
 0x2e9   : > { %1934 = vmatmul.bf16.gmra.mxu1 %v4155_v48  ;;  %v1671_v41 = vadd.f32 %v1670_v44, %v4592_v24 }
 0x2ee   : > { %v1719_v20 = vpop.f32.mrf.mxu1 }
 0x2f0   : > { %v1673_v0 = vpop.f32.mrf.mxu0 }
 0x2f1   : > { %v1674_v14 = vadd.f32 %v1673_v0, %v4048_v34  ;;  %v4595_v34 = vld [vmem:[#allocation17_spill] sm:$0xff] }
 0x2f3   : > { %1868 = vmatmul.bf16.gmra.mxu0 %v3952_v37  ;;  %v1720_v37 = vadd.f32 %v1719_v20, %v1671_v41 }
 0x2f5   : > { %v1893_v21 = vpack.c.bf16 %v1720_v37, %v1718_v13 }
 0x2f6   : > { %v1722_v53 = vpop.f32.mrf.mxu1 }
 0x2f7   : > { %v1723_v39 = vadd.f32 %v1722_v53, %v1674_v14 }
 0x2f8   : > { %v1675_v11 = vpop.f32.mrf.mxu0 }
 0x2f9   : > { %1939 = vmatmul.bf16.gmra.mxu1 %v4160_v55  ;;  %v1676_v9 = vadd.f32 %v1675_v11, %v4052_v49  ;;  %v1664_v49 = vadd.f32 %v1663_v40, %v4595_v34 }
 0x2fb   : > { %v1713_v44 = vadd.f32 %v1712_v33, %v1664_v49 }
 0x2fd   : > { %v1890_v20 = vpack.c.bf16 %v1715_v17, %v1713_v44 }
 0x2fe   : > { %v1724_v4 = vpop.f32.mrf.mxu1 }
 0x2ff   : > { %v1725_v22 = vadd.f32 %v1724_v4, %v1676_v9 }
 0x300   : > { %v1834_v46 = vpop.f32.mrf.mxu0 }
 0x301   : > { %v1896_v7 = vpack.c.bf16 %v1725_v22, %v1723_v39  ;;  %v4168_v45 = vadd.f32 %v1834_v46, %v4061_v43  ;;  %v4177_v43 = vld [vmem:[%s3652_s16 + $0x30] sm:$0xff]  ;;  %s2672_s16 = sshll.u32 %s3552_s28, 4  ;;  %v3490_v39 = vmov 0   ;;  %s3425_s28 = scalar_lea.hbm %s3424_s14, 12 }
 0x302   : > { %p376_p1 = scmp.lt.s32.totalorder %s2672_s16, 31  ;;  %3308 = vset.pattern.permute.xlu0 %v3490_v39  ;;  %3309 = vset.pattern.permute.xlu1 %v3490_v39  ;;  %p3426_p4 = scmp.ne.s32.totalorder %s3424_s14, %s3425_s28 }
 0x303   : > { %1955 = vmatpush.bf16.msrb.mxu2 %v1896_v7  ;;  %3310 = vset.pattern.permute.xlu2 %v3490_v39 }
 0x304   : > { %s4605_s16 = smov (!%p376_p1, %s2672_s16), 31  ;;  %p3427_p8 = pnand %p3426_p4, %p3598_p7 }
 0x305   : > { %s2673_s26 = sshll.u32 %s4605_s16, 3  ;;  %s3429_s16 = scalar_lea.hbm %s4565_s7, 24 }
 0x306   : > { %s4239_s20 = scalar_lea.vmem %s4560_s2, %s2673_s26  ;;  %p3428_p9 = pneg %p3427_p8 }
 0x307   : > { %1956 = vmatpush.bf16.msrb.mxu2 %v1893_v21  ;;  %v2101_v22 = vld [vmem:[%s4239_s20] sm:$0xff]  ;;  %v2103_v37 = vld [vmem:[%s4239_s20 + $0x10] sm:$0xff]  ;;  %v2102_v7 = vld [vmem:[%s4239_s20 + $0x8] sm:$0xff]  ;;  %p3431_p2 = scmp.lt.s32.totalorder %s3429_s16, %s3425_s28 }
 0x308   : > { %v1836_v18 = vpop.f32.mrf.mxu0  ;;  %2119 = vperm.xlu0 %3308, %v2101_v22   ;;  %2129 = vperm.xlu1 %3309, %v2103_v37   ;;  %v2104_v17 = vld [vmem:[%s4239_s20 + $0x18] sm:$0xff] }
 0x309   : > { %v4174_v0 = vadd.f32 %v1836_v18, %v1788_v58  ;;  %1944 = vmatmul.bf16.gmra.mxu1 %v4177_v43  ;;  %v2107_v18 = vld [vmem:[%s4239_s20 + $0x30] sm:$0xff]  ;;  %p3432_p11 = por %p3431_p2, %p3430_p10 }
 0x30b   : > { %v1876_v61 = vpack.c.bf16 %v4174_v0, %v4168_v45  ;;  %1957 = vmatpush.bf16.msrb.mxu2 %v1890_v20  ;;  %p3433_p12 = pnand %p3432_p11, %p3428_p9 }
 0x30f   : > { %1958 = vmatpush.bf16.msrb.mxu2 %v1887_v12 }
 0x310   : > { %v1839_v40 = vpop.f32.mrf.mxu0  ;;  %2124 = vperm.xlu0 %3308, %v2102_v7   ;;  %2134 = vperm.xlu1 %3309, %v2104_v17  }
 0x311   : > { %v4183_v28 = vadd.f32 %v1839_v40, %v4082_v6 }
 0x313   : > { %1959 = vmatpush.bf16.msrb.mxu2 %v1884_v50  ;;  %v1810_v50 = vpop.f32.mrf.mxu3 }
 0x317   : > { %1960 = vmatpush.bf16.msrb.mxu2 %v1881_v36 }
 0x318   : > { %v1841_v27 = vpop.f32.mrf.mxu0  ;;  %2149 = vperm.xlu0 %3308, %v2107_v18  }
 0x319   : > { %v4193_v33 = vadd.f32 %v1841_v27, %v1793_v10  ;;  %1949 = vmatmul.bf16.gmra.mxu1 %v4196_v15 }
 0x31b   : > { %v1879_v6 = vpack.c.bf16 %v4193_v33, %v4183_v28  ;;  %1961 = vmatpush.bf16.msrb.mxu2 %v1878_v35  ;;  %v1812_v51 = vpop.f32.mrf.mxu3 }
 0x31f   : > { %1962 = vmatpush.bf16.msrb.mxu2 %v1875_v25 }
 0x320   : > { %v1844_v23 = vpop.f32.mrf.mxu0 }
 0x321   : > { %v4208_v16 = vadd.f32 %v1844_v23, %v4110_v5 }
 0x322   : > { %1963 = vmatmul.bf16.vlgmr.msrb.gmra.mxu2 %v4106_v57 }
 0x323   : > { %v1815_v14 = vpop.f32.mrf.mxu3 }
 0x328   : > { %v1846_v59 = vpop.f32.mrf.mxu0 }
 0x329   : > { %v4213_v36 = vadd.f32 %v1846_v59, %v1798_v42 }
 0x32b   : > { %v1882_v60 = vpack.c.bf16 %v4213_v36, %v4208_v16  ;;  %v2112_v16 = vld [vmem:[%s4239_s20 + $0x58] sm:$0xff] }
 0x330   : > { %v1849_v26 = vpop.f32.mrf.mxu0 }
 0x331   : > { %v4218_v35 = vadd.f32 %v1849_v26, %v4129_v30  ;;  %v1761_v30 = vpop.f32.mrf.mxu2 }
 0x332   : > { %1968 = vmatmul.bf16.gmra.mxu2 %v4125_v56  ;;  %v1811_v42 = vadd.f32 %v1810_v50, %v1761_v30  ;;  %v2111_v50 = vld [vmem:[%s4239_s20 + $0x50] sm:$0xff] }
 0x338   : > { %v1851_v25 = vpop.f32.mrf.mxu0 }
 0x339   : > { %v4225_v5 = vadd.f32 %v1851_v25, %v1803_v1  ;;  %v1763_v32 = vpop.f32.mrf.mxu2  ;;  %v2108_v1 = vld [vmem:[%s4239_s20 + $0x38] sm:$0xff]  ;;  %v1808_v25 = vadd.f32 %v1807_v47, %v4223_v29  ;;  %v2113_v29 = vld [vmem:[%s4239_s20 + $0x60] sm:$0xff]  ;;  %v1915_v47 = vpop.f32.mrf.mxu1 }
 0x33a   : > { %v1813_v27 = vadd.f32 %v1812_v51, %v1763_v32  ;;  %2154 = vperm.xlu1 %3309, %v2108_v1  }
 0x33b   : > { %v1885_v3 = vpack.c.bf16 %v4225_v5, %v4218_v35  ;;  %v2109_v5 = vld [vmem:[%s4239_s20 + $0x40] sm:$0xff] }
 0x340   : > { %v1854_v19 = vpop.f32.mrf.mxu0 }
 0x341   : > { %v4230_v8 = vadd.f32 %v1854_v19, %v4146_v62  ;;  %v1766_v11 = vpop.f32.mrf.mxu2  ;;  %v1817_v62 = vpop.f32.mrf.mxu3 }
 0x342   : > { %1973 = vmatmul.bf16.gmra.mxu2 %v4142_v52  ;;  %v1816_v20 = vadd.f32 %v1815_v14, %v1766_v11  ;;  %2169 = vperm.xlu1 %3309, %v2111_v50   ;;  %v2105_v11 = vld [vmem:[%s4239_s20 + $0x20] sm:$0xff]  ;;  %v1917_v35 = vpop.f32.mrf.mxu1 }
 0x343   : > { %2139 = vperm.xlu2 %3310, %v2105_v11  }
 0x348   : > { %v1856_v12 = vpop.f32.mrf.mxu0 }
 0x349   : > { %v1768_v4 = vpop.f32.mrf.mxu2  ;;  %v1820_v31 = vpop.f32.mrf.mxu3  ;;  %v1857_v32 = vadd.f32 %v1856_v12, %v1808_v25  ;;  %v2114_v12 = vld [vmem:[%s4239_s20 + $0x68] sm:$0xff] }
 0x34a   : > { %v1818_v21 = vadd.f32 %v1817_v62, %v1768_v4  ;;  %v2110_v4 = vld [vmem:[%s4239_s20 + $0x48] sm:$0xff]  ;;  %2184 = vperm.xlu1 %3309, %v2114_v12   ;;  %v1920_v36 = vpop.f32.mrf.mxu1 }
 0x34b   : > { %2164 = vperm.xlu0 %3308, %v2110_v4   ;;  %v1888_v30 = vpack.c.bf16 %v1857_v32, %v4230_v8  ;;  %v2106_v8 = vld [vmem:[%s4239_s20 + $0x28] sm:$0xff] }
 0x34c   : > { %2144 = vperm.xlu2 %3310, %v2106_v8  }
 0x350   : > { %v1859_v53 = vpop.f32.mrf.mxu0 }
 0x351   : > { %v1771_v46 = vpop.f32.mrf.mxu2  ;;  %v1822_v2 = vpop.f32.mrf.mxu3  ;;  %v1860_v19 = vadd.f32 %v1859_v53, %v1811_v42  ;;  %v2116_v53 = vld [vmem:[%s4239_s20 + $0x78] sm:$0xff] }
 0x352   : > { %1978 = vmatmul.bf16.gmra.mxu2 %v4150_v54  ;;  %v1821_v13 = vadd.f32 %v1820_v31, %v1771_v46  ;;  %v1922_v14 = vpop.f32.mrf.mxu1 }
 0x353   : > { %2179 = vperm.xlu0 %3308, %v2113_v29  }
 0x354   : > { %2159 = vperm.xlu2 %3310, %v2109_v5  }
 0x358   : > { %v1861_v9 = vpop.f32.mrf.mxu0 }
 0x359   : > { %v1773_v38 = vpop.f32.mrf.mxu2  ;;  %v1862_v59 = vadd.f32 %v1861_v9, %v1813_v27 }
 0x35a   : > { %v1823_v34 = vadd.f32 %v1822_v2, %v1773_v38 }
 0x35b   : > { %v1891_v51 = vpack.c.bf16 %v1862_v59, %v1860_v19  ;;  %2194 = vperm.xlu0 %3308, %v2116_v53  }
 0x35c   : > { %2174 = vperm.xlu2 %3310, %v2112_v16  }
 0x360   : > { %v1864_v24 = vpop.f32.mrf.mxu0 }
 0x361   : > { %v1865_v23 = vadd.f32 %v1864_v24, %v1816_v20 }
 0x362   : > { %1983 = vmatmul.bf16.gmra.mxu2 %v4155_v48 }
 0x368   : > { %v1866_v41 = vpop.f32.mrf.mxu0 }
 0x369   : > { %v1867_v40 = vadd.f32 %v1866_v41, %v1818_v21 }
 0x36b   : > { %v1894_v26 = vpack.c.bf16 %v1867_v40, %v1865_v23 }
 0x370   : > { %v1869_v63 = vpop.f32.mrf.mxu0 }
 0x371   : > { %v1870_v58 = vadd.f32 %v1869_v63, %v1821_v13 }
 0x372   : > { %1988 = vmatmul.bf16.gmra.mxu2 %v4160_v55 }
 0x378   : > { %v1871_v49 = vpop.f32.mrf.mxu0 }
 0x379   : > { %v1872_v44 = vadd.f32 %v1871_v49, %v1823_v34 }
 0x37a   : > { %v4293_v13 = vpop.permute.xlu1 %2129 }
 0x37b   : > { %v1897_v10 = vpack.c.bf16 %v1872_v44, %v1870_v58 }
 0x37d   : > { %2004 = vmatpush.bf16.msrb.mxu3 %v1897_v10 }
 0x381   : > { %2005 = vmatpush.bf16.msrb.mxu3 %v1894_v26 }
 0x382   : > { %1993 = vmatmul.bf16.gmra.mxu2 %v4177_v43 }
 0x385   : > { %2006 = vmatpush.bf16.msrb.mxu3 %v1891_v51 }
 0x389   : > { %2007 = vmatpush.bf16.msrb.mxu3 %v1888_v30 }
 0x38d   : > { %2008 = vmatpush.bf16.msrb.mxu3 %v1885_v3  ;;  %v2115_v3 = vld [vmem:[%s4239_s20 + $0x70] sm:$0xff] }
 0x38e   : > { %2189 = vperm.xlu2 %3310, %v2115_v3  }
 0x391   : > { %2009 = vmatpush.bf16.msrb.mxu3 %v1882_v60 }
 0x392   : > { %1998 = vmatmul.bf16.gmra.mxu2 %v4196_v15 }
 0x395   : > { %2010 = vmatpush.bf16.msrb.mxu3 %v1879_v6  ;;  %v1925_v6 = vpop.f32.mrf.mxu1 }
 0x399   : > { %2011 = vmatpush.bf16.msrb.mxu3 %v1876_v61 }
 0x39c   : > { %2012 = vmatmul.bf16.vlgmr.msrb.gmra.mxu3 %v4106_v57 }
 0x39d   : > { %v1927_v0 = vpop.f32.mrf.mxu1  ;;  %v4306_v1 = vpop.permute.xlu2 %2139 }
 0x3a5   : > { %v1964_v60 = vpop.f32.mrf.mxu2  ;;  %v1930_v9 = vpop.f32.mrf.mxu1 }
 0x3ac   : > { %2017 = vmatmul.bf16.gmra.mxu3 %v4125_v56 }
 0x3ad   : > { %v1966_v28 = vpop.f32.mrf.mxu2  ;;  %v1932_v24 = vpop.f32.mrf.mxu1 }
 0x3b5   : > { %v1969_v33 = vpop.f32.mrf.mxu2  ;;  %v1935_v39 = vpop.f32.mrf.mxu1 }
 0x3bc   : > { %2022 = vmatmul.bf16.gmra.mxu3 %v4142_v52  ;;  %v1898_v52 = vld [vmem:[%s4564_s6] sm:$0x7] }
 0x3bd   : > { %v1971_v45 = vpop.f32.mrf.mxu2  ;;  %v1937_v22 = vpop.f32.mrf.mxu1  ;;  %v4283_v63 = vperm.slane %v1898_v52, 0  ;;  %v4300_v40 = vperm.slane %v1898_v52, 2 }
 0x3bf   : > { %v1916_v7 = vadd.f32 %v1915_v47, %v4283_v63  ;;  %v1918_v38 = vadd.f32 %v1917_v35, %v4283_v63  ;;  %v1921_v34 = vadd.f32 %v1920_v36, %v4283_v63  ;;  %v1923_v21 = vadd.f32 %v1922_v14, %v4283_v63 }
 0x3c0   : > { %v1926_v27 = vadd.f32 %v1925_v6, %v4283_v63  ;;  %v1928_v42 = vadd.f32 %v1927_v0, %v4283_v63  ;;  %v4315_v30 = vadd.f32 %v1932_v24, %v4283_v63  ;;  %v4321_v11 = vadd.f32 %v1935_v39, %v4283_v63  ;;  %v4346_v0 = vpop.permute.xlu1 %2134 }
 0x3c1   : > { %v2053_v17 = vmax.f32 %v1916_v7, 0.0  ;;  %v2056_v18 = vmax.f32 %v1918_v38, 0.0  ;;  %v2059_v25 = vmax.f32 %v1921_v34, 0.0  ;;  %v2062_v32 = vmax.f32 %v1923_v21, 0.0 }
 0x3c2   : > { %v4327_v47 = vadd.f32 %v1937_v22, %v4283_v63  ;;  %v2065_v8 = vmax.f32 %v1926_v27, 0.0  ;;  %v2068_v35 = vmax.f32 %v1928_v42, 0.0 }
 0x3c5   : > { %v1974_v61 = vpop.f32.mrf.mxu2  ;;  %v1940_v31 = vpop.f32.mrf.mxu1 }
 0x3c6   : > { %v4337_v14 = vadd.f32 %v1940_v31, %v4283_v63 }
 0x3cc   : > { %2027 = vmatmul.bf16.gmra.mxu3 %v4150_v54  ;;  %v4285_v54 = vperm.slane %v1898_v52, 1  ;;  %v2209_v52 = vadd.f32 %v4306_v1, %v2065_v8 }
 0x3cd   : > { %v1976_v57 = vpop.f32.mrf.mxu2  ;;  %v1942_v10 = vpop.f32.mrf.mxu1 }
 0x3ce   : > { %v1967_v2 = vadd.f32 %v1966_v28, %v4285_v54  ;;  %v1970_v49 = vadd.f32 %v1969_v33, %v4285_v54  ;;  %v1972_v58 = vadd.f32 %v1971_v45, %v4285_v54  ;;  %v1975_v23 = vadd.f32 %v1974_v61, %v4285_v54 }
 0x3cf   : > { %v1977_v59 = vadd.f32 %v1976_v57, %v4285_v54  ;;  %v2077_v61 = vmax.f32 %v4321_v11, 0.0  ;;  %v2080_v57 = vmax.f32 %v4327_v47, 0.0  ;;  %v4357_v22 = vadd.f32 %v1942_v10, %v4283_v63 }
 0x3d0   : > { %v2057_v20 = vmax.f32 %v1967_v2, 0.0  ;;  %v2060_v19 = vmax.f32 %v1970_v49, 0.0  ;;  %v2063_v51 = vmax.f32 %v1972_v58, 0.0  ;;  %v2066_v53 = vmax.f32 %v1975_v23, 0.0  ;;  %v4366_v49 = vpop.permute.xlu2 %2144 }
 0x3d1   : > { %v2069_v5 = vmax.f32 %v1977_v59, 0.0  ;;  %v2206_v2 = vadd.f32 %v4346_v0, %v2062_v32  ;;  %v2212_v58 = vadd.f32 %v4366_v49, %v2068_v35  ;;  %v2086_v23 = vmax.f32 %v4357_v22, 0.0 }
 0x3d2   : > { %v2210_v31 = vadd.f32 %v4306_v1, %v2066_v53  ;;  %v2207_v34 = vadd.f32 %v4346_v0, %v2063_v51 }
 0x3d3   : > { %v2287_v59 = vmax.f32 %v2209_v52, %v2212_v58 }
 0x3d5   : > { %v1979_v62 = vpop.f32.mrf.mxu2  ;;  %v2288_v8 = vrot.slane %v2287_v59, 4 }
 0x3d6   : > { %v4312_v4 = vadd.f32 %v1979_v62, %v4285_v54  ;;  %v2203_v62 = vadd.f32 %v4293_v13, %v2059_v25 }
 0x3d8   : > { %v2072_v36 = vmax.f32 %v4312_v4, 0.0  ;;  %v2266_v10 = vmax.f32 %v2203_v62, %v2206_v2 }
 0x3dc   : > { %2032 = vmatmul.bf16.gmra.mxu3 %v4155_v48  ;;  %v1965_v48 = vadd.f32 %v1964_v60, %v4285_v54  ;;  %v2074_v60 = vmax.f32 %v4315_v30, 0.0 }
 0x3dd   : > { %v1981_v41 = vpop.f32.mrf.mxu2 }
 0x3de   : > { %v2054_v44 = vmax.f32 %v1965_v48, 0.0  ;;  %v4318_v50 = vadd.f32 %v1981_v41, %v4285_v54  ;;  %v2204_v41 = vadd.f32 %v4293_v13, %v2060_v19 }
 0x3e0   : > { %v2075_v3 = vmax.f32 %v4318_v50, 0.0  ;;  %v2273_v27 = vmax.f32 %v2204_v41, %v2207_v34  ;;  %v4383_v41 = vpop.permute.xlu1 %2154 }
 0x3e1   : > { %v2218_v52 = vadd.f32 %v4383_v41, %v2074_v60 }
 0x3e2   : > { %v2274_v32 = vrot.slane %v2273_v27, 4 }
 0x3e5   : > { %v1984_v56 = vpop.f32.mrf.mxu2 }
 0x3e6   : > { %v4324_v29 = vadd.f32 %v1984_v56, %v4285_v54 }
 0x3ec   : > { %2037 = vmatmul.bf16.gmra.mxu3 %v4160_v55  ;;  %v4291_v55 = vpop.permute.xlu0 %2119 }
 0x3ed   : > { %v1986_v46 = vpop.f32.mrf.mxu2  ;;  %v2197_v33 = vadd.f32 %v4291_v55, %v2053_v17  ;;  %v2198_v6 = vadd.f32 %v4291_v55, %v2054_v44  ;;  %v2083_v17 = vmax.f32 %v4337_v14, 0.0  ;;  %v2213_v44 = vadd.f32 %v4366_v49, %v2069_v5 }
 0x3ee   : > { %v4330_v12 = vadd.f32 %v1986_v46, %v4285_v54 }
 0x3f0   : > { %v2081_v24 = vmax.f32 %v4330_v12, 0.0 }
 0x3f4   : > { %v4344_v45 = vpop.permute.xlu0 %2124 }
 0x3f5   : > { %v1989_v37 = vpop.f32.mrf.mxu2  ;;  %v2200_v39 = vadd.f32 %v4344_v45, %v2056_v18  ;;  %v2201_v56 = vadd.f32 %v4344_v45, %v2057_v20 }
 0x3f6   : > { %v4340_v28 = vadd.f32 %v1989_v37, %v4285_v54  ;;  %v1945_v37 = vpop.f32.mrf.mxu1 }
 0x3f7   : > { %v2245_v48 = vmax.f32 %v2197_v33, %v2200_v39  ;;  %v2252_v38 = vmax.f32 %v2198_v6, %v2201_v56  ;;  %v4376_v51 = vadd.f32 %v1945_v37, %v4283_v63  ;;  %v2275_v6 = vmax.f32 %v2273_v27, %v2274_v32 }
 0x3f8   : > { %v2084_v21 = vmax.f32 %v4340_v28, 0.0  ;;  %v2289_v39 = vmax.f32 %v2287_v59, %v2288_v8 }
 0x3f9   : > { %v2246_v18 = vrot.slane %v2245_v48, 4  ;;  %v2253_v20 = vrot.slane %v2252_v38, 4  ;;  %v2089_v27 = vmax.f32 %v4376_v51, 0.0 }
 0x3fb   : > { %v2247_v25 = vmax.f32 %v2245_v48, %v2246_v18  ;;  %v2254_v19 = vmax.f32 %v2252_v38, %v2253_v20  ;;  %v2276_v48 = vrot.slane %v2275_v6, 2  ;;  %v2290_v38 = vrot.slane %v2289_v39, 2 }
 0x3fc   : > { %2042 = vmatmul.bf16.gmra.mxu3 %v4177_v43  ;;  %v4309_v43 = vadd.f32 %v1930_v9, %v4283_v63  ;;  %v2078_v9 = vmax.f32 %v4324_v29, 0.0  ;;  %v4381_v62 = vpop.permute.xlu0 %2149  ;;  %v2219_v18 = vadd.f32 %v4383_v41, %v2075_v3 }
 0x3fd   : > { %v1991_v26 = vpop.f32.mrf.mxu2  ;;  %v2248_v35 = vrot.slane %v2247_v25, 2  ;;  %v2255_v5 = vrot.slane %v2254_v19, 2  ;;  %v2216_v34 = vadd.f32 %v4381_v62, %v2072_v36  ;;  %v2291_v59 = vmax.f32 %v2289_v39, %v2290_v38 }
 0x3fe   : > { %v2071_v16 = vmax.f32 %v4309_v43, 0.0  ;;  %v4360_v46 = vadd.f32 %v1991_v26, %v4285_v54  ;;  %v2294_v26 = vmax.f32 %v2210_v31, %v2213_v44  ;;  %v2267_v43 = vrot.slane %v2266_v10, 4  ;;  %v1947_v58 = vpop.f32.mrf.mxu1 }
 0x3ff   : > { %v2249_v31 = vmax.f32 %v2247_v25, %v2248_v35  ;;  %v2256_v37 = vmax.f32 %v2254_v19, %v2255_v5  ;;  %v2292_v32 = vrot.slane %v2291_v59, 1  ;;  %v2315_v35 = vmax.f32 %v2216_v34, %v2219_v18 }
 0x400   : > { %v2295_v53 = vrot.slane %v2294_v26, 4  ;;  %v2268_v33 = vmax.f32 %v2266_v10, %v2267_v43  ;;  %v2277_v10 = vmax.f32 %v2275_v6, %v2276_v48 }
 0x401   : > { %v2257_v20 = vrot.slane %v2256_v37, 1  ;;  %v2316_v38 = vrot.slane %v2315_v35, 4 }
 0x402   : > { %v2296_v56 = vmax.f32 %v2294_v26, %v2295_v53  ;;  %v2278_v36 = vrot.slane %v2277_v10, 1 }
 0x403   : > { %v2258_v4 = vmax.f32 %v2256_v37, %v2257_v20 }
 0x404   : > { %v2297_v2 = vrot.slane %v2296_v56, 2  ;;  %v2279_v42 = vmax.f32 %v2277_v10, %v2278_v36  ;;  %v2317_v10 = vmax.f32 %v2315_v35, %v2316_v38 }
 0x405   : > { %v1994_v7 = vpop.f32.mrf.mxu2  ;;  %v2414_v5 = vmax.f32 %v2258_v4, 0.0  ;;  %v4412_v4 = vpop.permute.xlu1 %2169 }
 0x406   : > { %v4379_v30 = vadd.f32 %v1994_v7, %v4285_v54  ;;  %v2269_v7 = vrot.slane %v2268_v33, 2  ;;  %v2298_v26 = vmax.f32 %v2296_v56, %v2297_v2 }
 0x408   : > { %v2270_v60 = vmax.f32 %v2268_v33, %v2269_v7  ;;  %v2299_v8 = vrot.slane %v2298_v26, 1  ;;  %v2293_v33 = vmax.f32 %v2291_v59, %v2292_v32  ;;  %v4397_v7 = vadd.f32 %v1947_v58, %v4283_v63  ;;  %v1950_v59 = vpop.f32.mrf.mxu1 }
 0x409   : > { %v2318_v32 = vrot.slane %v2317_v10, 2  ;;  %v4427_v38 = vadd.f32 %v1950_v59, %v4283_v63 }
 0x40a   : > { %v2271_v43 = vrot.slane %v2270_v60, 1  ;;  %v2300_v6 = vmax.f32 %v2298_v26, %v2299_v8  ;;  %v2419_v37 = vmax.f32 %v2293_v33, 0.0  ;;  %v2090_v33 = vmax.f32 %v4379_v30, 0.0 }
 0x40b   : > { %v2227_v30 = vadd.f32 %v4412_v4, %v2083_v17 }
 0x40c   : > { %2047 = vmatmul.bf16.gmra.mxu3 %v4196_v15  ;;  %v2215_v15 = vadd.f32 %v4381_v62, %v2071_v16  ;;  %v2250_v16 = vrot.slane %v2249_v31, 1  ;;  %v2272_v3 = vmax.f32 %v2270_v60, %v2271_v43  ;;  %v2420_v48 = vmax.f32 %v2300_v6, 0.0  ;;  %v4404_v60 = vpop.permute.xlu0 %2164 }
 0x40d   : > { %v4390_v44 = vpop.f32.mrf.mxu2  ;;  %v2225_v29 = vadd.f32 %v4404_v60, %v2081_v24 }
 0x40e   : > { %v2308_v25 = vmax.f32 %v2215_v15, %v2218_v52  ;;  %v2251_v19 = vmax.f32 %v2249_v31, %v2250_v16  ;;  %v2416_v56 = vmax.f32 %v2272_v3, 0.0  ;;  %v2417_v15 = vmax.f32 %v2279_v42, 0.0  ;;  %v4399_v31 = vpop.permute.xlu2 %2159 }
 0x40f   : > { %v2221_v2 = vadd.f32 %v4399_v31, %v2077_v61  ;;  %v2441_v58 = vpack.c.bf16 %v2420_v48, %v2419_v37  ;;  %v2222_v42 = vadd.f32 %v4399_v31, %v2078_v9  ;;  %v2224_v61 = vadd.f32 %v4404_v60, %v2080_v57 }
 0x410   : > { %v2309_v53 = vrot.slane %v2308_v25, 4  ;;  %v2413_v50 = vmax.f32 %v2251_v19, 0.0  ;;  %v2439_v16 = vpack.c.bf16 %v2417_v15, %v2416_v56  ;;  %v2319_v57 = vmax.f32 %v2317_v10, %v2318_v32 }
 0x411   : > { %v2475_v43 = vunpack.c.l.b16 %v2441_v58  ;;  %v2476_v36 = vunpack.c.h.b16 %v2441_v58  ;;  %v2329_v35 = vmax.f32 %v2221_v2, %v2224_v61  ;;  %v1997_v12 = vadd.f32 %v4390_v44, %v4285_v54 }
 0x412   : > { %v2437_v39 = vpack.c.bf16 %v2414_v5, %v2413_v50  ;;  %v2310_v52 = vmax.f32 %v2308_v25, %v2309_v53  ;;  %v2472_v25 = vunpack.c.l.b16 %v2439_v16  ;;  %v2473_v19 = vunpack.c.h.b16 %v2439_v16 }
 0x413   : > { %v2336_v5 = vmax.f32 %v2222_v42, %v2225_v29  ;;  %v2330_v24 = vrot.slane %v2329_v35, 4  ;;  %v2092_v56 = vmax.f32 %v4397_v7, 0.0  ;;  %v2320_v15 = vrot.slane %v2319_v57, 1 }
 0x414   : > { %v2469_v34 = vunpack.c.l.b16 %v2437_v39  ;;  %v2470_v18 = vunpack.c.h.b16 %v2437_v39  ;;  %v2311_v20 = vrot.slane %v2310_v52, 2  ;;  %v2093_v7 = vmax.f32 %v1997_v12, 0.0  ;;  %v4443_v17 = vpop.permute.xlu0 %2179 }
 0x415   : > { %v1999_v26 = vpop.f32.mrf.mxu2  ;;  %v2331_v48 = vmax.f32 %v2329_v35, %v2330_v24  ;;  %v4596_v10 = vmax.f32 %v4360_v46, 0.0 }
 0x416   : > { %v2312_v11 = vmax.f32 %v2310_v52, %v2311_v20  ;;  %v2494_v9 = vsel %vm2493_vm0, %v2472_v25, %v2469_v34  ;;  %v2507_v8 = vsel %vm2493_vm0, %v2473_v19, %v2470_v18  ;;  %v2337_v52 = vrot.slane %v2336_v5, 4  ;;  %v4435_v16 = vpop.permute.xlu2 %2174 }
 0x417   : > { %v2496_v50 = vsel %vm2495_vm1, %v2475_v43, %v2494_v9  ;;  %v2508_v47 = vsel %vm2495_vm1, %v2476_v36, %v2507_v8  ;;  %v2321_v34 = vmax.f32 %v2319_v57, %v2320_v15  ;;  %v2228_v18 = vadd.f32 %v4412_v4, %v2084_v21  ;;  %v1952_v21 = vpop.f32.mrf.mxu1  ;;  %v4447_v43 = vpop.permute.xlu1 %2184 }
 0x418   : > { %v2313_v53 = vrot.slane %v2312_v11, 1  ;;  %v2338_v44 = vmax.f32 %v2336_v5, %v2337_v52  ;;  %v2332_v20 = vrot.slane %v2331_v48, 2  ;;  %v2230_v58 = vadd.f32 %v4435_v16, %v2086_v23 }
 0x419   : > { %v2231_v14 = vadd.f32 %v4435_v16, %v4596_v10  ;;  %v2423_v28 = vmax.f32 %v2321_v34, 0.0  ;;  %v2095_v36 = vmax.f32 %v4427_v38, 0.0  ;;  %v1953_v8 = vadd.f32 %v1952_v21, %v4283_v63 }
 0x41a   : > { %v2314_v6 = vmax.f32 %v2312_v11, %v2313_v53  ;;  %v2339_v59 = vrot.slane %v2338_v44, 2  ;;  %v2333_v19 = vmax.f32 %v2331_v48, %v2332_v20  ;;  %v2000_v11 = vadd.f32 %v1999_v26, %v4285_v54 }
 0x41b   : > { %v2350_v61 = vmax.f32 %v2227_v30, %v2230_v58  ;;  %v2357_v22 = vmax.f32 %v2228_v18, %v2231_v14  ;;  %v2236_v5 = vadd.f32 %v4447_v43, %v2092_v56  ;;  %v2234_v63 = vadd.f32 %v4443_v17, %v2090_v33 }
 0x41c   : > { %v2422_v37 = vmax.f32 %v2314_v6, 0.0  ;;  %v2340_v46 = vmax.f32 %v2338_v44, %v2339_v59  ;;  %v2237_v38 = vadd.f32 %v4447_v43, %v2093_v7 }
 0x41d   : > { %v2001_v25 = vpop.f32.mrf.mxu2  ;;  %v2351_v29 = vrot.slane %v2350_v61, 4  ;;  %v2358_v9 = vrot.slane %v2357_v22, 4 }
 0x41e   : > { %v2443_v23 = vpack.c.bf16 %v2423_v28, %v2422_v37  ;;  %v2002_v53 = vadd.f32 %v2001_v25, %v4285_v54  ;;  %v2341_v12 = vrot.slane %v2340_v46, 1  ;;  %v2096_v54 = vmax.f32 %v2000_v11, 0.0 }
 0x41f   : > { %v2013_v3 = vpop.f32.mrf.mxu3  ;;  %v2352_v6 = vmax.f32 %v2350_v61, %v2351_v29  ;;  %v2359_v24 = vmax.f32 %v2357_v22, %v2358_v9  ;;  %v2098_v37 = vmax.f32 %v1953_v8, 0.0  ;;  %v2378_v58 = vmax.f32 %v2234_v63, %v2237_v38 }
 0x420   : > { %v2014_v39 = vadd.f32 %v2013_v3, %v4300_v40  ;;  %v2478_v35 = vunpack.c.l.b16 %v2443_v23  ;;  %v2479_v57 = vunpack.c.h.b16 %v2443_v23  ;;  %v2334_v3 = vrot.slane %v2333_v19, 1 }
 0x421   : > { %v2353_v15 = vrot.slane %v2352_v6, 2  ;;  %v2360_v52 = vrot.slane %v2359_v24, 2  ;;  %v2099_v56 = vmax.f32 %v2002_v53, 0.0 }
 0x422   : > { %v2055_v2 = vmax.f32 %v2014_v39, 0.0  ;;  %v4461_v39 = vsel %vm2497_vm2, %v2479_v57, %v2508_v47  ;;  %v2335_v34 = vmax.f32 %v2333_v19, %v2334_v3  ;;  %v4468_v47 = vpop.permute.xlu0 %2194 }
 0x423   : > { %v2354_v44 = vmax.f32 %v2352_v6, %v2353_v15  ;;  %v2361_v18 = vmax.f32 %v2359_v24, %v2360_v52  ;;  %v2242_v25 = vadd.f32 %v4468_v47, %v2098_v37  ;;  %v2243_v19 = vadd.f32 %v4468_v47, %v2099_v56 }
 0x424   : > { %v2199_v42 = vadd.f32 %v4291_v55, %v2055_v2  ;;  %v2233_v55 = vadd.f32 %v4443_v17, %v2089_v27  ;;  %v4458_v27 = vsel %vm2497_vm2, %v2478_v35, %v2496_v50  ;;  %v4466_v2 = vpop.permute.xlu2 %2189  ;;  %v2342_v50 = vmax.f32 %v2340_v46, %v2341_v12 }
 0x425   : > { %v2355_v14 = vrot.slane %v2354_v44, 1  ;;  %v2362_v28 = vrot.slane %v2361_v18, 1  ;;  %v2240_v59 = vadd.f32 %v4466_v2, %v2096_v54  ;;  %v2425_v11 = vmax.f32 %v2335_v34, 0.0 }
 0x426   : > { %v2371_v30 = vmax.f32 %v2233_v55, %v2236_v5  ;;  %v2426_v61 = vmax.f32 %v2342_v50, 0.0 }
 0x427   : > { %v2015_v32 = vpop.f32.mrf.mxu3  ;;  %v2356_v23 = vmax.f32 %v2354_v44, %v2355_v14  ;;  %v2363_v46 = vmax.f32 %v2361_v18, %v2362_v28 }
 0x428   : > { %v2016_v26 = vadd.f32 %v2015_v32, %v4300_v40  ;;  %v2372_v33 = vrot.slane %v2371_v30, 4  ;;  %v2445_v8 = vpack.c.bf16 %v2426_v61, %v2425_v11 }
 0x429   : > { %v2428_v12 = vmax.f32 %v2356_v23, 0.0  ;;  %v2429_v6 = vmax.f32 %v2363_v46, 0.0 }
 0x42a   : > { %v2058_v51 = vmax.f32 %v2016_v26, 0.0  ;;  %v2373_v22 = vmax.f32 %v2371_v30, %v2372_v33  ;;  %v2481_v37 = vunpack.c.l.b16 %v2445_v8  ;;  %v2482_v30 = vunpack.c.h.b16 %v2445_v8 }
 0x42b   : > { %v2447_v18 = vpack.c.bf16 %v2429_v6, %v2428_v12 }
 0x42c   : > { %v2202_v48 = vadd.f32 %v4344_v45, %v2058_v51  ;;  %v2239_v45 = vadd.f32 %v4466_v2, %v2095_v36  ;;  %v2374_v55 = vrot.slane %v2373_v22, 2  ;;  %v2399_v36 = vmax.f32 %v2240_v59, %v2243_v19 }
 0x42d   : > { %v2484_v11 = vunpack.c.l.b16 %v2447_v18  ;;  %v2485_v61 = vunpack.c.h.b16 %v2447_v18 }
 0x42e   : > { %v2259_v20 = vmax.f32 %v2199_v42, %v2202_v48  ;;  %v2379_v42 = vrot.slane %v2378_v58, 4  ;;  %v2392_v9 = vmax.f32 %v2239_v45, %v2242_v25  ;;  %v2375_v53 = vmax.f32 %v2373_v22, %v2374_v55 }
 0x42f   : > { %v2018_v10 = vpop.f32.mrf.mxu3  ;;  %v2400_v5 = vrot.slane %v2399_v36, 4 }
 0x430   : > { %v2019_v7 = vadd.f32 %v2018_v10, %v4300_v40  ;;  %v2260_v21 = vrot.slane %v2259_v20, 4  ;;  %v2380_v32 = vmax.f32 %v2378_v58, %v2379_v42  ;;  %v2393_v57 = vrot.slane %v2392_v9, 4 }
 0x431   : > { %v2376_v24 = vrot.slane %v2375_v53, 1  ;;  %v2401_v52 = vmax.f32 %v2399_v36, %v2400_v5 }
 0x432   : > { %v2261_v29 = vmax.f32 %v2259_v20, %v2260_v21  ;;  %v2381_v26 = vrot.slane %v2380_v32, 2  ;;  %v2061_v35 = vmax.f32 %v2019_v7, 0.0  ;;  %v2394_v15 = vmax.f32 %v2392_v9, %v2393_v57 }
 0x433   : > { %v2377_v48 = vmax.f32 %v2375_v53, %v2376_v24  ;;  %v2402_v50 = vrot.slane %v2401_v52, 2  ;;  %v2500_v7 = vsel %vm2499_vm3, %v2481_v37, %v4458_v27 }
 0x434   : > { %v2382_v51 = vmax.f32 %v2380_v32, %v2381_v26  ;;  %v2262_v54 = vrot.slane %v2261_v29, 2  ;;  %v2395_v34 = vrot.slane %v2394_v15, 2  ;;  %v2205_v44 = vadd.f32 %v4293_v13, %v2061_v35 }
 0x435   : > { %v2431_v33 = vmax.f32 %v2377_v48, 0.0  ;;  %v2403_v28 = vmax.f32 %v2401_v52, %v2402_v50  ;;  %v2510_v13 = vsel %vm2499_vm3, %v2482_v30, %v4461_v39  ;;  %v2502_v8 = vsel %vm2501_vm4, %v2484_v11, %v2500_v7 }
 0x436   : > { %v2383_v56 = vrot.slane %v2382_v51, 1  ;;  %v2263_v58 = vmax.f32 %v2261_v29, %v2262_v54  ;;  %v2396_v14 = vmax.f32 %v2394_v15, %v2395_v34  ;;  %v2511_v39 = vsel %vm2501_vm4, %v2485_v61, %v2510_v13 }
 0x437   : > { %v2020_v3 = vpop.f32.mrf.mxu3  ;;  %v2404_v25 = vrot.slane %v2403_v28, 1 }
 0x438   : > { %v2021_v63 = vadd.f32 %v2020_v3, %v4300_v40  ;;  %v2384_v20 = vmax.f32 %v2382_v51, %v2383_v56  ;;  %v2397_v21 = vrot.slane %v2396_v14, 1 }
 0x439   : > { %v2405_v55 = vmax.f32 %v2403_v28, %v2404_v25 }
 0x43a   : > { %v2064_v38 = vmax.f32 %v2021_v63, 0.0  ;;  %v2432_v45 = vmax.f32 %v2384_v20, 0.0  ;;  %v2398_v46 = vmax.f32 %v2396_v14, %v2397_v21 }
 0x43b   : > { %v2435_v36 = vmax.f32 %v2405_v55, 0.0 }
 0x43c   : > { %v2208_v10 = vadd.f32 %v4346_v0, %v2064_v38  ;;  %v2449_v22 = vpack.c.bf16 %v2432_v45, %v2431_v33  ;;  %v2264_v0 = vrot.slane %v2263_v58, 1  ;;  %v2434_v27 = vmax.f32 %v2398_v46, 0.0 }
 0x43e   : > { %v2280_v59 = vmax.f32 %v2205_v44, %v2208_v10  ;;  %v2487_v29 = vunpack.c.l.b16 %v2449_v22  ;;  %v2488_v9 = vunpack.c.h.b16 %v2449_v22  ;;  %v2265_v53 = vmax.f32 %v2263_v58, %v2264_v0 }
 0x43f   : > { %v2023_v19 = vpop.f32.mrf.mxu3  ;;  %v2451_v35 = vpack.c.bf16 %v2435_v36, %v2434_v27 }
 0x440   : > { %v2024_v42 = vadd.f32 %v2023_v19, %v4300_v40  ;;  %v2281_v23 = vrot.slane %v2280_v59, 4  ;;  %v2504_v5 = vsel %vm2503_vm5, %v2487_v29, %v2502_v8  ;;  %v2512_v3 = vsel %vm2503_vm5, %v2488_v9, %v2511_v39 }
 0x441   : > { %v2490_v6 = vunpack.c.l.b16 %v2451_v35  ;;  %v2491_v24 = vunpack.c.h.b16 %v2451_v35  ;;  %v2415_v54 = vmax.f32 %v2265_v53, 0.0 }
 0x442   : > { %v2282_v32 = vmax.f32 %v2280_v59, %v2281_v23  ;;  %v2067_v51 = vmax.f32 %v2024_v42, 0.0 }
 0x443   : > { %v2506_v52 = vsel %vm2505_vm6, %v2490_v6, %v2504_v5  ;;  %v2513_v37 = vsel %vm2505_vm6, %v2491_v24, %v2512_v3  ;;  %v2438_v34 = vpack.c.bf16 %v2415_v54, %v2415_v54 }
 0x444   : > { %v2283_v26 = vrot.slane %v2282_v32, 2  ;;  %v2521_v38 = vpack.c.b16 %v2513_v37, %v2506_v52  ;;  %v2211_v30 = vadd.f32 %v4306_v1, %v2067_v51 }
 0x445   : > { %v2471_v10 = vunpack.c.l.b16 %v2438_v34 }
 0x446   : > { %v2284_v57 = vmax.f32 %v2282_v32, %v2283_v26  ;;  %2525 = vst [vmem:[%s4493_s0] sm:$0xff] %v2521_v38 }
 0x447   : > { %v2025_v12 = vpop.f32.mrf.mxu3 }
 0x448   : > { %v2026_v63 = vadd.f32 %v2025_v12, %v4300_v40  ;;  %v2285_v15 = vrot.slane %v2284_v57, 1 }
 0x44a   : > { %v2070_v48 = vmax.f32 %v2026_v63, 0.0  ;;  %v2286_v56 = vmax.f32 %v2284_v57, %v2285_v15 }
 0x44c   : > { %v2418_v50 = vmax.f32 %v2286_v56, 0.0  ;;  %v2214_v44 = vadd.f32 %v4366_v49, %v2070_v48 }
 0x44e   : > { %v2440_v18 = vpack.c.bf16 %v2418_v50, %v2418_v50  ;;  %v2301_v20 = vmax.f32 %v2211_v30, %v2214_v44 }
 0x44f   : > { %v2028_v33 = vpop.f32.mrf.mxu3 }
 0x450   : > { %v2029_v58 = vadd.f32 %v2028_v33, %v4300_v40  ;;  %v2474_v14 = vunpack.c.l.b16 %v2440_v18  ;;  %v2302_v28 = vrot.slane %v2301_v20, 4 }
 0x452   : > { %v2514_v45 = vsel %vm2493_vm0, %v2474_v14, %v2471_v10  ;;  %v2303_v59 = vmax.f32 %v2301_v20, %v2302_v28  ;;  %v2073_v25 = vmax.f32 %v2029_v58, 0.0 }
 0x454   : > { %v2304_v1 = vrot.slane %v2303_v59, 2  ;;  %v2217_v22 = vadd.f32 %v4381_v62, %v2073_v25 }
 0x456   : > { %v2305_v7 = vmax.f32 %v2303_v59, %v2304_v1 }
 0x457   : > { %v2030_v21 = vpop.f32.mrf.mxu3 }
 0x458   : > { %v2031_v49 = vadd.f32 %v2030_v21, %v4300_v40  ;;  %v2306_v19 = vrot.slane %v2305_v7, 1 }
 0x45a   : > { %v2076_v13 = vmax.f32 %v2031_v49, 0.0  ;;  %v2307_v11 = vmax.f32 %v2305_v7, %v2306_v19 }
 0x45c   : > { %v2421_v61 = vmax.f32 %v2307_v11, 0.0  ;;  %v2220_v42 = vadd.f32 %v4383_v41, %v2076_v13 }
 0x45e   : > { %v2442_v0 = vpack.c.bf16 %v2421_v61, %v2421_v61  ;;  %v2322_v23 = vmax.f32 %v2217_v22, %v2220_v42 }
 0x45f   : > { %v2033_v46 = vpop.f32.mrf.mxu3 }
 0x460   : > { %v2477_v55 = vunpack.c.l.b16 %v2442_v0  ;;  %v2323_v32 = vrot.slane %v2322_v23, 4  ;;  %v2034_v27 = vadd.f32 %v2033_v46, %v4300_v40 }
 0x462   : > { %v2515_v29 = vsel %vm2495_vm1, %v2477_v55, %v2514_v45  ;;  %v2324_v9 = vmax.f32 %v2322_v23, %v2323_v32  ;;  %v2079_v53 = vmax.f32 %v2034_v27, 0.0 }
 0x464   : > { %v2325_v36 = vrot.slane %v2324_v9, 2  ;;  %v2223_v5 = vadd.f32 %v4399_v31, %v2079_v53 }
 0x466   : > { %v2326_v8 = vmax.f32 %v2324_v9, %v2325_v36 }
 0x467   : > { %v2035_v39 = vpop.f32.mrf.mxu3 }
 0x468   : > { %v2036_v26 = vadd.f32 %v2035_v39, %v4300_v40  ;;  %v2327_v35 = vrot.slane %v2326_v8, 1 }
 0x46a   : > { %v2082_v62 = vmax.f32 %v2036_v26, 0.0  ;;  %v2328_v57 = vmax.f32 %v2326_v8, %v2327_v35 }
 0x46c   : > { %v2424_v41 = vmax.f32 %v2328_v57, 0.0  ;;  %v2226_v3 = vadd.f32 %v4404_v60, %v2082_v62 }
 0x46e   : > { %v2444_v12 = vpack.c.bf16 %v2424_v41, %v2424_v41  ;;  %v2343_v6 = vmax.f32 %v2223_v5, %v2226_v3 }
 0x46f   : > { %v2038_v24 = vpop.f32.mrf.mxu3 }
 0x470   : > { %v2480_v51 = vunpack.c.l.b16 %v2444_v12  ;;  %v2344_v63 = vrot.slane %v2343_v6, 4  ;;  %v2039_v52 = vadd.f32 %v2038_v24, %v4300_v40 }
 0x472   : > { %v2516_v54 = vsel %vm2497_vm2, %v2480_v51, %v2515_v29  ;;  %v2345_v15 = vmax.f32 %v2343_v6, %v2344_v63  ;;  %v2085_v38 = vmax.f32 %v2039_v52, 0.0 }
 0x474   : > { %v2346_v37 = vrot.slane %v2345_v15, 2  ;;  %v2229_v44 = vadd.f32 %v4412_v4, %v2085_v38 }
 0x476   : > { %v2347_v48 = vmax.f32 %v2345_v15, %v2346_v37 }
 0x477   : > { %v2040_v56 = vpop.f32.mrf.mxu3 }
 0x478   : > { %v2348_v30 = vrot.slane %v2347_v48, 1  ;;  %v2041_v34 = vadd.f32 %v2040_v56, %v4300_v40 }
 0x47a   : > { %v2349_v31 = vmax.f32 %v2347_v48, %v2348_v30  ;;  %v2088_v50 = vmax.f32 %v2041_v34, 0.0 }
 0x47c   : > { %v2427_v60 = vmax.f32 %v2349_v31, 0.0  ;;  %v2232_v18 = vadd.f32 %v4435_v16, %v2088_v50 }
 0x47e   : > { %v2446_v20 = vpack.c.bf16 %v2427_v60, %v2427_v60  ;;  %v2364_v33 = vmax.f32 %v2229_v44, %v2232_v18 }
 0x47f   : > { %v2043_v58 = vpop.f32.mrf.mxu3 }
 0x480   : > { %v2483_v10 = vunpack.c.l.b16 %v2446_v20  ;;  %v2365_v14 = vrot.slane %v2364_v33, 4  ;;  %v2044_v1 = vadd.f32 %v2043_v58, %v4300_v40 }
 0x482   : > { %v2517_v28 = vsel %vm2499_vm3, %v2483_v10, %v2516_v54  ;;  %v2366_v45 = vmax.f32 %v2364_v33, %v2365_v14  ;;  %v2091_v49 = vmax.f32 %v2044_v1, 0.0 }
 0x484   : > { %v2367_v59 = vrot.slane %v2366_v45, 2  ;;  %v2235_v11 = vadd.f32 %v4443_v17, %v2091_v49 }
 0x486   : > { %v2368_v7 = vmax.f32 %v2366_v45, %v2367_v59 }
 0x487   : > { %v2045_v21 = vpop.f32.mrf.mxu3 }
 0x488   : > { %v2369_v25 = vrot.slane %v2368_v7, 1  ;;  %v2046_v19 = vadd.f32 %v2045_v21, %v4300_v40 }
 0x48a   : > { %v2370_v4 = vmax.f32 %v2368_v7, %v2369_v25  ;;  %v2094_v13 = vmax.f32 %v2046_v19, 0.0 }
 0x48c   : > { %v2430_v16 = vmax.f32 %v2370_v4, 0.0  ;;  %v2238_v61 = vadd.f32 %v4447_v43, %v2094_v13 }
 0x48e   : > { %v2448_v22 = vpack.c.bf16 %v2430_v16, %v2430_v16  ;;  %v2385_v42 = vmax.f32 %v2235_v11, %v2238_v61 }
 0x48f   : > { %v2048_v0 = vpop.f32.mrf.mxu3 }
 0x490   : > { %v2486_v23 = vunpack.c.l.b16 %v2448_v22  ;;  %v2386_v46 = vrot.slane %v2385_v42, 4  ;;  %v2049_v9 = vadd.f32 %v2048_v0, %v4300_v40 }
 0x492   : > { %v2518_v55 = vsel %vm2501_vm4, %v2486_v23, %v2517_v28  ;;  %v2387_v32 = vmax.f32 %v2385_v42, %v2386_v46  ;;  %v2097_v39 = vmax.f32 %v2049_v9, 0.0 }
 0x494   : > { %v2388_v29 = vrot.slane %v2387_v32, 2  ;;  %v2241_v35 = vadd.f32 %v4466_v2, %v2097_v39 }
 0x496   : > { %v2389_v27 = vmax.f32 %v2387_v32, %v2388_v29 }
 0x497   : > { %v2050_v36 = vpop.f32.mrf.mxu3 }
 0x498   : > { %v2390_v8 = vrot.slane %v2389_v27, 1  ;;  %v2051_v17 = vadd.f32 %v2050_v36, %v4300_v40 }
 0x49a   : > { %v2391_v53 = vmax.f32 %v2389_v27, %v2390_v8  ;;  %v2100_v43 = vmax.f32 %v2051_v17, 0.0 }
 0x49c   : > { %v2433_v26 = vmax.f32 %v2391_v53, 0.0  ;;  %v2244_v62 = vadd.f32 %v4468_v47, %v2100_v43 }
 0x49e   : > { %v2450_v57 = vpack.c.bf16 %v2433_v26, %v2433_v26  ;;  %v2406_v41 = vmax.f32 %v2241_v35, %v2244_v62 }
 0x4a0   : > { %v2489_v5 = vunpack.c.l.b16 %v2450_v57  ;;  %v2407_v3 = vrot.slane %v2406_v41, 4 }
 0x4a2   : > { %v2408_v12 = vmax.f32 %v2406_v41, %v2407_v3  ;;  %v2519_v6 = vsel %vm2503_vm5, %v2489_v5, %v2518_v55 }
 0x4a4   : > { %v2409_v24 = vrot.slane %v2408_v12, 2 }
 0x4a6   : > { %v2410_v51 = vmax.f32 %v2408_v12, %v2409_v24 }
 0x4a8   : > { %v2411_v40 = vrot.slane %v2410_v51, 1 }
 0x4aa   : > { %v2412_v63 = vmax.f32 %v2410_v51, %v2411_v40 }
 0x4ac   : > { %v2436_v54 = vmax.f32 %v2412_v63, 0.0 }
 0x4ae   : > { %v2452_v2 = vpack.c.bf16 %v2436_v54, %v2436_v54 }
 0x4b0   : > { %v2492_v47 = vunpack.c.l.b16 %v2452_v2 }
 0x4b2   : > { %v2520_v15 = vsel %vm2505_vm6, %v2492_v47, %v2519_v6 }
 0x4b3   : > { %v2522_v52 = vpack.c.b16 %v2520_v15, %v2520_v15 }
 0x4b5   : > { %2526 = vst [vmem:[%s4493_s0 + $0x8] sm:$0xf] %v2522_v52 }
 0x4b6   : > { %3436 = shalt.err (!%p3433_p12)
}
 0x4b7   : > { %3249 = dma.vmem_to_hbm [thread:$0]  (%p3598_p7), %s2542_s23, 192, %s2544_s19, %s2528_s11  }
 0x4b8 PF: > { %s2555_s18 = sand.u32 1, %s3471_s24   ;;  %p4598_p13 = scmp.ge.s32.totalorder %s3483_s27, 2 }
 0x4b9   : > { %s2556_s20 = scalar_lea.sflag [#allocation4], %s2555_s18 }
 0x4ba   : > { %p3263_p0 = pnand %p4598_p13, %p3566_p6 }
 0x4bc   : > { %p3264_p3 = pneg %p3263_p0 }
 0x4be   : > { %3466 = dma.done.wait (%p3264_p3), %s2556_s20, 192  }
 0x4bf   : > { %3468 = vsyncadd (%p3264_p3), %s2556_s20, 4294967104  ;;  %s4599_s27 = sld [smem:[#allocation15_spill]]  ;;  %s4602_s24 = smov %s3475_s25 }
 0x4c0   : > { %s4600_s5 = sld [smem:[#allocation13_spill]] }
 0x4c1   : > { %s4601_s26 = sld [smem:[#allocation16_spill]] }
 0x4c5   : > { %p23_p5 = scmp.ge.s32.totalorder %s4599_s27, 4  }
 0x4c6   : > { %s4603_s25 = smov %s4600_s5 }
 0x4c7   :  { %25 = sbr.rel (!%p23_p5) target bundleno = 10 (0xa), region = 113 }
 0x4cc   :  { %2562 = vsyncpa [#allocation3], 1 }
 0x4cd   :  { %2564 = vsyncpa [#allocation3 + $0x1], 1 }
 0x4ce   :  { %2565 = vsyncpa [#allocation6], 1 }
 0x4cf   :  { %2567 = vsyncpa [#allocation6 + $0x1], 1 }
 0x4d0   :  { %2568 = vsyncpa [#allocation4], 1 }
 0x4d1   :  { %2570 = vsyncpa [#allocation4 + $0x1], 1 }

</bundles_post_ra>
